<compile_context>
chip_gen: v7x
topology: tpu7x:2x2x1
jax: 0.10.0
libtpu: 0.0.40
codegen_flags: <defaults>
</compile_context>

<pallas_src>
import functools
import math

import numpy as np
import jax
import jax.numpy as jnp
from jax.experimental import pallas as pl
from jax.experimental.pallas import tpu as pltpu


# ----------------------------------------------------------------------------
# In-kernel helpers (operate on values already loaded into vregs)
# ----------------------------------------------------------------------------

def _ln(x, g, b):
    mu = jnp.mean(x, axis=-1, keepdims=True)
    var = jnp.mean((x - mu) ** 2, axis=-1, keepdims=True)
    return (x - mu) * jax.lax.rsqrt(var + 1e-5) * g + b


def _mm(x, w):
    """bf16 x bf16 matmul with f32 accumulation on the MXU."""
    return jnp.dot(x.astype(jnp.bfloat16), w, preferred_element_type=jnp.float32)


def _rope(x, cos, sin, rmat, invert=False):
    """Interleaved rotary: x*cos + rotate_half(x)*sin.

    rotate_half is a fixed signed pair-swap, applied as x @ rmat (exact, MXU)."""
    rh = jnp.dot(x, rmat, preferred_element_type=jnp.float32)
    return x * cos - rh * sin if invert else x * cos + rh * sin


def _attend(q, k, v, mask, heads, dim_head, scale):
    """q:(Nq,H*D) k,v:(Nk,H*D) mask:(1,Nk) or None. Heads stay packed in lanes."""
    outs = []
    for h in range(heads):
        sl = slice(h * dim_head, (h + 1) * dim_head)
        qh = q[:, sl].astype(jnp.bfloat16)
        kh = k[:, sl].astype(jnp.bfloat16)
        vh = v[:, sl].astype(jnp.bfloat16)
        # contract last dims directly (no k.T materialization)
        s = jax.lax.dot_general(qh, kh, (((1,), (1,)), ((), ())),
                                preferred_element_type=jnp.float32) * scale
        if mask is not None:
            s = jnp.where(mask > 0.5, s, -1e30)
        s = s - jnp.max(s, axis=-1, keepdims=True)
        p = jnp.exp(s)
        p = p * pl.reciprocal(jnp.sum(p, axis=-1, keepdims=True), approx=True)
        outs.append(jnp.dot(p.astype(jnp.bfloat16), vh,
                            preferred_element_type=jnp.float32))
    return outs[0] if heads == 1 else jnp.concatenate(outs, axis=-1)


def _ffn_body(x, g, b, w1, b1, w2, b2):
    h = _mm(_ln(x, g, b), w1) + b1
    hid = w2.shape[0]
    # TODO(synk): torch F.gelu defaults to the exact erf form; tanh approximation is
    # used here for guaranteed Mosaic lowering (~1e-3 divergence).
    h = h[:, :hid] * jax.nn.gelu(h[:, hid:], approximate=True)
    return _mm(h, w2) + b2


# ----------------------------------------------------------------------------
# Fused block kernels (one grid step = one batch element)
# ----------------------------------------------------------------------------

def _encoder_kernel(xq_ref, xc_ref, cq_ref, sq_ref, ck_ref, sk_ref, m_ref, r_ref,
                    ng_ref, nb_ref, ncg_ref, ncb_ref,
                    wq_ref, wkv_ref, wo_ref, bo_ref,
                    lg_ref, lb_ref, w1_ref, b1_ref, w2_ref, b2_ref,
                    o_ref, *, heads, dim_head):
    inner = heads * dim_head
    scale = 1.0 / math.sqrt(dim_head)
    xq = xq_ref[0].astype(jnp.float32)     # (Nq, dim)  latents
    xc = xc_ref[0].astype(jnp.float32)     # (Nk, dim)  input spikes
    rmat = r_ref[...]
    cq, sq = cq_ref[0], sq_ref[0]
    ck, sk = ck_ref[0], sk_ref[0]

    q = _mm(_ln(xq, ng_ref[...], nb_ref[...]), wq_ref[...])          # (Nq, inner)
    kv = _mm(_ln(xc, ncg_ref[...], ncb_ref[...]), wkv_ref[...])      # (Nk, 2*inner)
    k, v = kv[:, :inner], kv[:, inner:]

    q = _rope(q, cq, sq, rmat)
    k = _rope(k, ck, sk, rmat)
    v = _rope(v, ck, sk, rmat)                                       # rotate_value=True

    att = _attend(q, k, v, m_ref[0], heads, dim_head, scale)
    att = _rope(att, cq, sq, rmat, invert=True)                      # un-rotate output

    y = xq + _mm(att, wo_ref[...]) + bo_ref[...]
    y = y + _ffn_body(y, lg_ref[...], lb_ref[...],
                      w1_ref[...], b1_ref[...], w2_ref[...], b2_ref[...])
    o_ref[0] = y.astype(o_ref.dtype)


def _process_kernel(x_ref, c_ref, s_ref, r_ref,
                    ng_ref, nb_ref, wqkv_ref, wo_ref, bo_ref,
                    lg_ref, lb_ref, w1_ref, b1_ref, w2_ref, b2_ref,
                    o_ref, *, heads, dim_head):
    inner = heads * dim_head
    scale = 1.0 / math.sqrt(dim_head)
    x = x_ref[0].astype(jnp.float32)       # (N, dim) latents
    rmat = r_ref[...]
    c, s = c_ref[0], s_ref[0]

    qkv = _mm(_ln(x, ng_ref[...], nb_ref[...]), wqkv_ref[...])       # (N, 3*inner)
    q = _rope(qkv[:, :inner], c, s, rmat)
    k = _rope(qkv[:, inner:2 * inner], c, s, rmat)
    v = qkv[:, 2 * inner:]

    att = _attend(q, k, v, None, heads, dim_head, scale)             # no mask (full seq)
    y = x + _mm(att, wo_ref[...]) + bo_ref[...]
    y = y + _ffn_body(y, lg_ref[...], lb_ref[...],
                      w1_ref[...], b1_ref[...], w2_ref[...], b2_ref[...])
    o_ref[0] = y.astype(o_ref.dtype)


def _decoder_kernel(xq_ref, xc_ref, cq_ref, sq_ref, ck_ref, sk_ref, r_ref,
                    ng_ref, nb_ref, ncg_ref, ncb_ref,
                    wq_ref, wkv_ref, wo_ref, bo_ref,
                    lg_ref, lb_ref, w1_ref, b1_ref, w2_ref, b2_ref,
                    rw_ref, rb_ref,
                    o_ref, *, heads, dim_head):
    inner = heads * dim_head
    scale = 1.0 / math.sqrt(dim_head)
    xq = xq_ref[0].astype(jnp.float32)     # (Nout, dim) output queries
    xc = xc_ref[0].astype(jnp.float32)     # (Nlat, dim) latents
    rmat = r_ref[...]
    cq, sq = cq_ref[0], sq_ref[0]
    ck, sk = ck_ref[0], sk_ref[0]

    q = _rope(_mm(_ln(xq, ng_ref[...], nb_ref[...]), wq_ref[...]), cq, sq, rmat)
    kv = _mm(_ln(xc, ncg_ref[...], ncb_ref[...]), wkv_ref[...])
    k = _rope(kv[:, :inner], ck, sk, rmat)
    v = kv[:, inner:]                                                # rotate_value=False

    att = _attend(q, k, v, None, heads, dim_head, scale)             # latents never masked
    y = xq + _mm(att, wo_ref[...]) + bo_ref[...]
    y = y + _ffn_body(y, lg_ref[...], lb_ref[...],
                      w1_ref[...], b1_ref[...], w2_ref[...], b2_ref[...])
    # fused readout: dim -> 2
    o_ref[0] = (_mm(y, rw_ref[...]) + rb_ref[...]).astype(o_ref.dtype)


def _mse_kernel(p_ref, t_ref, w_ref, o_ref):
    p = p_ref[...].astype(jnp.float32)
    t = t_ref[...].astype(jnp.float32)
    w = w_ref[...].astype(jnp.float32)                      # (M, 1)
    per = jnp.mean((p - t) ** 2, axis=-1, keepdims=True)    # (M, 1)
    o_ref[...] = (jnp.sum(per * w) / jnp.sum(w)).reshape(1, 1)


# ----------------------------------------------------------------------------
# pallas_call wrappers
# ----------------------------------------------------------------------------

def _bspec(x):
    nd = x.ndim
    return pl.BlockSpec((1,) + tuple(x.shape[1:]),
                        lambda b, _nd=nd: (b,) + (0,) * (_nd - 1))


def _wspec(x):
    nd = x.ndim
    return pl.BlockSpec(tuple(x.shape), lambda b, _nd=nd: (0,) * _nd)


def _call_block(kern, batched, shared, out_shape):
    B = batched[0].shape[0]
    out_nd = len(out_shape.shape)
    return pl.pallas_call(
        kern,
        out_shape=out_shape,
        grid=(B,),
        in_specs=[_bspec(a) for a in batched] + [_wspec(a) for a in shared],
        out_specs=pl.BlockSpec((1,) + tuple(out_shape.shape[1:]),
                               lambda b, _nd=out_nd: (b,) + (0,) * (_nd - 1)),
        compiler_params=pltpu.CompilerParams(dimension_semantics=("parallel",)),
    )(*batched, *shared)


@functools.lru_cache(maxsize=None)
def _rotate_half_matrix(n):
    """rotate_half(x) == x @ R for interleaved rotary pairs (works for packed heads)."""
    r = np.zeros((n, n), np.float32)
    idx = np.arange(0, n, 2)
    r[idx + 1, idx] = -1.0
    r[idx, idx + 1] = 1.0
    return jnp.asarray(r)


def encoder_block(pa, pf, latents, inputs, rope_q, rope_k, mask, *, heads, dim_head):
    B, Nq, dim = latents.shape
    kern = functools.partial(_encoder_kernel, heads=heads, dim_head=dim_head)
    rmat = _rotate_half_matrix(heads * dim_head)
    batched = [latents, inputs, rope_q[0], rope_q[1], rope_k[0], rope_k[1], mask]
    shared = [rmat,
              pa["norm_g"], pa["norm_b"], pa["normc_g"], pa["normc_b"],
              pa["wq"], pa["wkv"], pa["wo"], pa["bo"],
              pf["ln_g"], pf["ln_b"], pf["w1"], pf["b1"], pf["w2"], pf["b2"]]
    return _call_block(kern, batched, shared,
                       jax.ShapeDtypeStruct((B, Nq, dim), jnp.float32))


def process_block(pa, pf, x, rope, *, heads, dim_head):
    B, N, dim = x.shape
    kern = functools.partial(_process_kernel, heads=heads, dim_head=dim_head)
    rmat = _rotate_half_matrix(heads * dim_head)
    batched = [x, rope[0], rope[1]]
    shared = [rmat, pa["norm_g"], pa["norm_b"], pa["wqkv"], pa["wo"], pa["bo"],
              pf["ln_g"], pf["ln_b"], pf["w1"], pf["b1"], pf["w2"], pf["b2"]]
    return _call_block(kern, batched, shared,
                       jax.ShapeDtypeStruct((B, N, dim), jnp.float32))


def decoder_block(pa, pf, rw, rb, xq, xc, rope_q, rope_k, *, heads, dim_head):
    B, Nq, dim = xq.shape
    kern = functools.partial(_decoder_kernel, heads=heads, dim_head=dim_head)
    rmat = _rotate_half_matrix(heads * dim_head)
    batched = [xq, xc, rope_q[0], rope_q[1], rope_k[0], rope_k[1]]
    shared = [rmat,
              pa["norm_g"], pa["norm_b"], pa["normc_g"], pa["normc_b"],
              pa["wq"], pa["wkv"], pa["wo"], pa["bo"],
              pf["ln_g"], pf["ln_b"], pf["w1"], pf["b1"], pf["w2"], pf["b2"],
              rw, rb]
    return _call_block(kern, batched, shared,
                       jax.ShapeDtypeStruct((B, Nq, 2), jnp.float32))


def weighted_mse(pred2d, target2d, w):
    M = pred2d.shape[0]
    out = pl.pallas_call(
        _mse_kernel,
        out_shape=jax.ShapeDtypeStruct((1, 1), jnp.float32),
    )(pred2d, target2d, w.reshape(M, 1))
    return out[0, 0]


# ----------------------------------------------------------------------------
# Rotary time embedding (POYO RotaryEmbedding) precomputed in glue
# ----------------------------------------------------------------------------

def rotary_freqs(timestamps, dim_head, t_min=1e-4, t_max=4.0):
    half = dim_head // 2
    vals = (2.0 * math.pi / t_min) * (t_min / t_max) ** (
        jnp.arange(0, half, 2, dtype=jnp.float32) / half)
    inv_freq = jnp.zeros((half,), jnp.float32).at[: dim_head // 4].set(vals)
    f = timestamps[..., None].astype(jnp.float32) * inv_freq      # (B, N, half)
    return jnp.repeat(f, 2, axis=-1)                              # (B, N, dim_head)


def make_rope(timestamps, dim_head, heads):
    """Returns (cos, sin), each (B, N, heads*dim_head), tiled per head (packed lanes)."""
    f = rotary_freqs(timestamps, dim_head)
    if heads > 1:
        f = jnp.tile(f, (1, 1, heads))
    return jnp.cos(f), jnp.sin(f)


# ----------------------------------------------------------------------------
# Parameter init (deterministic, synthetic); matmul weights stored in bf16
# ----------------------------------------------------------------------------

def init_poyo_params(key, *, dim, dim_head, num_latents, depth, cross_heads,
                     self_heads, n_units, n_sessions, emb_init_scale=0.02):
    keys = iter(jax.random.split(key, 256))

    def emb(n):
        return emb_init_scale * jax.random.normal(next(keys), (n, dim), jnp.float32)

    def lin_w(fi, fo):
        b = 1.0 / math.sqrt(fi)
        return jax.random.uniform(next(keys), (fi, fo), jnp.float32, -b, b).astype(
            jnp.bfloat16)

    def lin_b(fi, fo):
        b = 1.0 / math.sqrt(fi)
        return jax.random.uniform(next(keys), (1, fo), jnp.float32, -b, b)

    def cross_attn_p():
        inner = cross_heads * dim_head
        return dict(norm_g=jnp.ones((1, dim)), norm_b=jnp.zeros((1, dim)),
                    normc_g=jnp.ones((1, dim)), normc_b=jnp.zeros((1, dim)),
                    wq=lin_w(dim, inner), wkv=lin_w(dim, 2 * inner),
                    wo=lin_w(inner, dim), bo=lin_b(inner, dim))

    def self_attn_p():
        inner = self_heads * dim_head
        return dict(norm_g=jnp.ones((1, dim)), norm_b=jnp.zeros((1, dim)),
                    wqkv=lin_w(dim, 3 * inner),
                    wo=lin_w(inner, dim), bo=lin_b(inner, dim))

    def ffn_p(mult=4):
        return dict(ln_g=jnp.ones((1, dim)), ln_b=jnp.zeros((1, dim)),
                    w1=lin_w(dim, dim * mult * 2), b1=lin_b(dim, dim * mult * 2),
                    w2=lin_w(dim * mult, dim), b2=lin_b(dim * mult, dim))

    return dict(
        unit_emb=emb(n_units),
        session_emb=emb(n_sessions),
        spike_type_emb=emb(4),
        latent_emb=emb(num_latents),
        enc_atn=cross_attn_p(),
        enc_ffn=ffn_p(),
        proc_layers=[dict(attn=self_attn_p(), ffn=ffn_p()) for _ in range(depth)],
        dec_atn=cross_attn_p(),
        dec_ffn=ffn_p(),
        readout_w=lin_w(dim, 2),
        readout_b=lin_b(dim, 2),
    )


# ----------------------------------------------------------------------------
# POYO forward
# ----------------------------------------------------------------------------

def poyo_forward(params, batch, *, dim, dim_head, cross_heads, self_heads):
    # embeddings (gather glue)
    inputs = (params["unit_emb"][batch["spike_unit_index"]]
              + params["spike_type_emb"][batch["spike_type"]])          # (B, Nin, dim)
    latents = params["latent_emb"][batch["latent_index"]]               # (B, Nlat, dim)
    output_queries = params["session_emb"][batch["session_index"]]      # (B, Nout, dim)

    # rotary cos/sin tables (tiny; computed once, tiled per head for packed lanes)
    rope_in = make_rope(batch["spike_timestamps"], dim_head, cross_heads)
    rope_lat_c = make_rope(batch["latent_timestamps"], dim_head, cross_heads)
    rope_lat_s = make_rope(batch["latent_timestamps"], dim_head, self_heads)
    rope_out = make_rope(batch["output_timestamps"], dim_head, cross_heads)

    mask = batch["input_mask"].astype(jnp.float32)[:, None, :]          # (B, 1, Nin)

    # encode: latents attend to input spikes (rotate_value=True), fused with its FFN
    latents = encoder_block(params["enc_atn"], params["enc_ffn"],
                            latents, inputs, rope_lat_c, rope_in, mask,
                            heads=cross_heads, dim_head=dim_head)

    # process: self-attention layers over latents, each fused with its FFN
    for lp in params["proc_layers"]:
        latents = process_block(lp["attn"], lp["ffn"], latents, rope_lat_s,
                                heads=self_heads, dim_head=dim_head)

    # decode: output queries attend to latents (rotate_value=False) + FFN + readout
    pred = decoder_block(params["dec_atn"], params["dec_ffn"],
                         params["readout_w"], params["readout_b"],
                         output_queries, latents, rope_out, rope_lat_c,
                         heads=cross_heads, dim_head=dim_head)           # (B, Nout, 2)

    # weighted MSE on valid output tokens
    w = (batch["output_weights"] * batch["output_mask"].astype(jnp.float32))
    loss = weighted_mse(pred.reshape(-1, 2),
                        batch["output_values"].reshape(-1, 2),
                        w.reshape(-1))
    return pred, loss


# ----------------------------------------------------------------------------
# Main
# ----------------------------------------------------------------------------

if __name__ == "__main__":
    B = 2
    DIM, DIM_HEAD = 128, 32
    NUM_LATENTS, DEPTH = 16, 2
    CROSS_HEADS, SELF_HEADS = 1, 4
    N_UNITS, N_SESSIONS = 20, 3
    N_IN, N_OUT = 24, 8

    root = jax.random.PRNGKey(0)
    kp, k1, k2, k3, k4, k5, k6 = jax.random.split(root, 7)

    params = init_poyo_params(
        kp, dim=DIM, dim_head=DIM_HEAD, num_latents=NUM_LATENTS, depth=DEPTH,
        cross_heads=CROSS_HEADS, self_heads=SELF_HEADS,
        n_units=N_UNITS, n_sessions=N_SESSIONS)

    in_lens = jnp.array([N_IN, N_IN - 6])
    out_lens = jnp.array([N_OUT, N_OUT - 3])
    batch = dict(
        spike_unit_index=jax.random.randint(k1, (B, N_IN), 0, N_UNITS),
        spike_timestamps=jnp.sort(jax.random.uniform(k2, (B, N_IN)), axis=-1),
        spike_type=jax.random.randint(k3, (B, N_IN), 0, 4),
        input_mask=(jnp.arange(N_IN)[None, :] < in_lens[:, None]),
        latent_index=jnp.tile(jnp.arange(NUM_LATENTS)[None, :], (B, 1)),
        latent_timestamps=jnp.tile(jnp.linspace(0.0, 1.0, NUM_LATENTS)[None, :], (B, 1)),
        session_index=jnp.stack([jnp.zeros(N_OUT, jnp.int32),
                                 jnp.ones(N_OUT, jnp.int32)]),
        output_timestamps=jnp.sort(jax.random.uniform(k4, (B, N_OUT)), axis=-1),
        output_mask=(jnp.arange(N_OUT)[None, :] < out_lens[:, None]),
        output_values=jax.random.normal(k5, (B, N_OUT, 2)),
        output_weights=jnp.ones((B, N_OUT), jnp.float32),
    )

    pred, loss = poyo_forward(params, batch, dim=DIM, dim_head=DIM_HEAD,
                              cross_heads=CROSS_HEADS, self_heads=SELF_HEADS)
    jax.block_until_ready((pred, loss))

    # per-sample ragged output list (host-side), mirroring output_pred[i, output_mask[i]]
    # TODO(synk): the reference forward builds this list from an undefined/buggy
    # `output` variable; we build it from output_pred as intended.
    pred_np = np.asarray(pred)
    mask_np = np.asarray(batch["output_mask"])
    outputs = [pred_np[i][mask_np[i]] for i in range(B)]

    assert pred.shape == (B, N_OUT, 2)
    assert np.isfinite(pred_np).all() and np.isfinite(float(loss))
    assert outputs[0].shape == (int(out_lens[0]), 2)
    assert outputs[1].shape == (int(out_lens[1]), 2)
    print("KERNEL_OK")
</pallas_src>

<mosaic_0001>
module attributes {stable_mosaic.version = 11 : i64} {
  func.func @_encoder_kernel(%arg0: i32, %arg1: memref<1x16x128xf32, #tpu.memory_space<vmem>>, %arg2: memref<1x24x128xf32, #tpu.memory_space<vmem>>, %arg3: memref<1x16x32xf32, #tpu.memory_space<vmem>>, %arg4: memref<1x16x32xf32, #tpu.memory_space<vmem>>, %arg5: memref<1x24x32xf32, #tpu.memory_space<vmem>>, %arg6: memref<1x24x32xf32, #tpu.memory_space<vmem>>, %arg7: memref<1x1x24xf32, #tpu.memory_space<vmem>>, %arg8: memref<32x32xf32, #tpu.memory_space<vmem>>, %arg9: memref<1x128xf32, #tpu.memory_space<vmem>>, %arg10: memref<1x128xf32, #tpu.memory_space<vmem>>, %arg11: memref<1x128xf32, #tpu.memory_space<vmem>>, %arg12: memref<1x128xf32, #tpu.memory_space<vmem>>, %arg13: memref<128x32xbf16, #tpu.memory_space<vmem>>, %arg14: memref<128x64xbf16, #tpu.memory_space<vmem>>, %arg15: memref<32x128xbf16, #tpu.memory_space<vmem>>, %arg16: memref<1x128xf32, #tpu.memory_space<vmem>>, %arg17: memref<1x128xf32, #tpu.memory_space<vmem>>, %arg18: memref<1x128xf32, #tpu.memory_space<vmem>>, %arg19: memref<128x1024xbf16, #tpu.memory_space<vmem>>, %arg20: memref<1x1024xf32, #tpu.memory_space<vmem>>, %arg21: memref<512x128xbf16, #tpu.memory_space<vmem>>, %arg22: memref<1x128xf32, #tpu.memory_space<vmem>>, %arg23: memref<1x16x128xf32, #tpu.memory_space<vmem>>) attributes {dimension_semantics = [#tpu.dimension_semantics<parallel>], iteration_bounds = array<i64: 2>, scalar_prefetch = 0 : i64, scratch_operands = 0 : i64, tpu.core_type = #tpu.core_type<tc>, window_params = [{transform_indices = @transform_0, window_bounds = array<i64: 1, 16, 128>}, {transform_indices = @transform_1, window_bounds = array<i64: 1, 24, 128>}, {transform_indices = @transform_2, window_bounds = array<i64: 1, 16, 32>}, {transform_indices = @transform_3, window_bounds = array<i64: 1, 16, 32>}, {transform_indices = @transform_4, window_bounds = array<i64: 1, 24, 32>}, {transform_indices = @transform_5, window_bounds = array<i64: 1, 24, 32>}, {transform_indices = @transform_6, window_bounds = array<i64: 1, 1, 24>}, {pipeline_mode = #tpu.pipeline_mode<synchronous>, transform_indices = @transform_7, window_bounds = array<i64: 32, 32>}, {pipeline_mode = #tpu.pipeline_mode<synchronous>, transform_indices = @transform_8, window_bounds = array<i64: 1, 128>}, {pipeline_mode = #tpu.pipeline_mode<synchronous>, transform_indices = @transform_9, window_bounds = array<i64: 1, 128>}, {pipeline_mode = #tpu.pipeline_mode<synchronous>, transform_indices = @transform_10, window_bounds = array<i64: 1, 128>}, {pipeline_mode = #tpu.pipeline_mode<synchronous>, transform_indices = @transform_11, window_bounds = array<i64: 1, 128>}, {pipeline_mode = #tpu.pipeline_mode<synchronous>, transform_indices = @transform_12, window_bounds = array<i64: 128, 32>}, {pipeline_mode = #tpu.pipeline_mode<synchronous>, transform_indices = @transform_13, window_bounds = array<i64: 128, 64>}, {pipeline_mode = #tpu.pipeline_mode<synchronous>, transform_indices = @transform_14, window_bounds = array<i64: 32, 128>}, {pipeline_mode = #tpu.pipeline_mode<synchronous>, transform_indices = @transform_15, window_bounds = array<i64: 1, 128>}, {pipeline_mode = #tpu.pipeline_mode<synchronous>, transform_indices = @transform_16, window_bounds = array<i64: 1, 128>}, {pipeline_mode = #tpu.pipeline_mode<synchronous>, transform_indices = @transform_17, window_bounds = array<i64: 1, 128>}, {pipeline_mode = #tpu.pipeline_mode<synchronous>, transform_indices = @transform_18, window_bounds = array<i64: 128, 1024>}, {pipeline_mode = #tpu.pipeline_mode<synchronous>, transform_indices = @transform_19, window_bounds = array<i64: 1, 1024>}, {pipeline_mode = #tpu.pipeline_mode<synchronous>, transform_indices = @transform_20, window_bounds = array<i64: 512, 128>}, {pipeline_mode = #tpu.pipeline_mode<synchronous>, transform_indices = @transform_21, window_bounds = array<i64: 1, 128>}, {transform_indices = @transform_22, window_bounds = array<i64: 1, 16, 128>}]} {
    %c0 = arith.constant 0 : index
    %c0_0 = arith.constant 0 : index
    %c0_1 = arith.constant 0 : index
    %0 = vector.load %arg1[%c0, %c0_0, %c0_1] : memref<1x16x128xf32, #tpu.memory_space<vmem>>, vector<1x16x128xf32>
    %1 = vector.shape_cast %0 : vector<1x16x128xf32> to vector<16x128xf32>
    %c0_2 = arith.constant 0 : index
    %c0_3 = arith.constant 0 : index
    %c0_4 = arith.constant 0 : index
    %2 = vector.load %arg2[%c0_2, %c0_3, %c0_4] : memref<1x24x128xf32, #tpu.memory_space<vmem>>, vector<1x24x128xf32>
    %3 = vector.shape_cast %2 : vector<1x24x128xf32> to vector<24x128xf32>
    %c0_5 = arith.constant 0 : index
    %c0_6 = arith.constant 0 : index
    %4 = vector.load %arg8[%c0_5, %c0_6] : memref<32x32xf32, #tpu.memory_space<vmem>>, vector<32x32xf32>
    %c0_7 = arith.constant 0 : index
    %c0_8 = arith.constant 0 : index
    %c0_9 = arith.constant 0 : index
    %5 = vector.load %arg3[%c0_7, %c0_8, %c0_9] : memref<1x16x32xf32, #tpu.memory_space<vmem>>, vector<1x16x32xf32>
    %6 = vector.shape_cast %5 : vector<1x16x32xf32> to vector<16x32xf32>
    %c0_10 = arith.constant 0 : index
    %c0_11 = arith.constant 0 : index
    %c0_12 = arith.constant 0 : index
    %7 = vector.load %arg4[%c0_10, %c0_11, %c0_12] : memref<1x16x32xf32, #tpu.memory_space<vmem>>, vector<1x16x32xf32>
    %8 = vector.shape_cast %7 : vector<1x16x32xf32> to vector<16x32xf32>
    %c0_13 = arith.constant 0 : index
    %c0_14 = arith.constant 0 : index
    %c0_15 = arith.constant 0 : index
    %9 = vector.load %arg5[%c0_13, %c0_14, %c0_15] : memref<1x24x32xf32, #tpu.memory_space<vmem>>, vector<1x24x32xf32>
    %10 = vector.shape_cast %9 : vector<1x24x32xf32> to vector<24x32xf32>
    %c0_16 = arith.constant 0 : index
    %c0_17 = arith.constant 0 : index
    %c0_18 = arith.constant 0 : index
    %11 = vector.load %arg6[%c0_16, %c0_17, %c0_18] : memref<1x24x32xf32, #tpu.memory_space<vmem>>, vector<1x24x32xf32>
    %12 = vector.shape_cast %11 : vector<1x24x32xf32> to vector<24x32xf32>
    %c0_19 = arith.constant 0 : index
    %c0_20 = arith.constant 0 : index
    %13 = vector.load %arg9[%c0_19, %c0_20] : memref<1x128xf32, #tpu.memory_space<vmem>>, vector<1x128xf32>
    %c0_21 = arith.constant 0 : index
    %c0_22 = arith.constant 0 : index
    %14 = vector.load %arg10[%c0_21, %c0_22] : memref<1x128xf32, #tpu.memory_space<vmem>>, vector<1x128xf32>
    %cst = arith.constant dense<0.000000e+00> : vector<16xf32>
    %15 = vector.multi_reduction <add>, %1, %cst [1] : vector<16x128xf32> to vector<16xf32>
    %16 = vector.shape_cast %15 : vector<16xf32> to vector<16x1xf32>
    %cst_23 = arith.constant 1.280000e+02 : f32
    %17 = vector.broadcast %cst_23 : f32 to vector<16x1xf32>
    %18 = arith.divf %16, %17 : vector<16x1xf32>
    %19 = vector.broadcast %18 : vector<16x1xf32> to vector<16x128xf32>
    %20 = arith.subf %1, %19 : vector<16x128xf32>
    %21 = arith.mulf %20, %20 : vector<16x128xf32>
    %cst_24 = arith.constant dense<0.000000e+00> : vector<16xf32>
    %22 = vector.multi_reduction <add>, %21, %cst_24 [1] : vector<16x128xf32> to vector<16xf32>
    %23 = vector.shape_cast %22 : vector<16xf32> to vector<16x1xf32>
    %cst_25 = arith.constant 1.280000e+02 : f32
    %24 = vector.broadcast %cst_25 : f32 to vector<16x1xf32>
    %25 = arith.divf %23, %24 : vector<16x1xf32>
    %26 = vector.broadcast %18 : vector<16x1xf32> to vector<16x128xf32>
    %27 = arith.subf %1, %26 : vector<16x128xf32>
    %cst_26 = arith.constant 9.99999974E-6 : f32
    %28 = vector.broadcast %cst_26 : f32 to vector<16x1xf32>
    %29 = arith.addf %25, %28 : vector<16x1xf32>
    %30 = math.rsqrt %29 : vector<16x1xf32>
    %31 = vector.broadcast %30 : vector<16x1xf32> to vector<16x128xf32>
    %32 = arith.mulf %27, %31 : vector<16x128xf32>
    %33 = vector.broadcast %13 : vector<1x128xf32> to vector<16x128xf32>
    %34 = arith.mulf %32, %33 : vector<16x128xf32>
    %35 = vector.broadcast %14 : vector<1x128xf32> to vector<16x128xf32>
    %36 = arith.addf %34, %35 : vector<16x128xf32>
    %c0_27 = arith.constant 0 : index
    %c0_28 = arith.constant 0 : index
    %37 = vector.load %arg13[%c0_27, %c0_28] : memref<128x32xbf16, #tpu.memory_space<vmem>>, vector<128x32xbf16>
    %38 = arith.truncf %36 : vector<16x128xf32> to vector<16x128xbf16>
    %cst_29 = arith.constant dense<0.000000e+00> : vector<16x32xf32>
    %39 = tpu.matmul %38, %37, %cst_29 {dimension_numbers = #tpu.dot_dimension_numbers<[1], [0], [0], [1], [0, 0, 1, 1], [], []>} : vector<16x128xbf16>, vector<128x32xbf16>, vector<16x32xf32> -> vector<16x32xf32>
    %c0_30 = arith.constant 0 : index
    %c0_31 = arith.constant 0 : index
    %40 = vector.load %arg11[%c0_30, %c0_31] : memref<1x128xf32, #tpu.memory_space<vmem>>, vector<1x128xf32>
    %c0_32 = arith.constant 0 : index
    %c0_33 = arith.constant 0 : index
    %41 = vector.load %arg12[%c0_32, %c0_33] : memref<1x128xf32, #tpu.memory_space<vmem>>, vector<1x128xf32>
    %cst_34 = arith.constant dense<0.000000e+00> : vector<24xf32>
    %42 = vector.multi_reduction <add>, %3, %cst_34 [1] : vector<24x128xf32> to vector<24xf32>
    %43 = vector.shape_cast %42 : vector<24xf32> to vector<24x1xf32>
    %cst_35 = arith.constant 1.280000e+02 : f32
    %44 = vector.broadcast %cst_35 : f32 to vector<24x1xf32>
    %45 = arith.divf %43, %44 : vector<24x1xf32>
    %46 = vector.broadcast %45 : vector<24x1xf32> to vector<24x128xf32>
    %47 = arith.subf %3, %46 : vector<24x128xf32>
    %48 = arith.mulf %47, %47 : vector<24x128xf32>
    %cst_36 = arith.constant dense<0.000000e+00> : vector<24xf32>
    %49 = vector.multi_reduction <add>, %48, %cst_36 [1] : vector<24x128xf32> to vector<24xf32>
    %50 = vector.shape_cast %49 : vector<24xf32> to vector<24x1xf32>
    %cst_37 = arith.constant 1.280000e+02 : f32
    %51 = vector.broadcast %cst_37 : f32 to vector<24x1xf32>
    %52 = arith.divf %50, %51 : vector<24x1xf32>
    %53 = vector.broadcast %45 : vector<24x1xf32> to vector<24x128xf32>
    %54 = arith.subf %3, %53 : vector<24x128xf32>
    %cst_38 = arith.constant 9.99999974E-6 : f32
    %55 = vector.broadcast %cst_38 : f32 to vector<24x1xf32>
    %56 = arith.addf %52, %55 : vector<24x1xf32>
    %57 = math.rsqrt %56 : vector<24x1xf32>
    %58 = vector.broadcast %57 : vector<24x1xf32> to vector<24x128xf32>
    %59 = arith.mulf %54, %58 : vector<24x128xf32>
    %60 = vector.broadcast %40 : vector<1x128xf32> to vector<24x128xf32>
    %61 = arith.mulf %59, %60 : vector<24x128xf32>
    %62 = vector.broadcast %41 : vector<1x128xf32> to vector<24x128xf32>
    %63 = arith.addf %61, %62 : vector<24x128xf32>
    %c0_39 = arith.constant 0 : index
    %c0_40 = arith.constant 0 : index
    %64 = vector.load %arg14[%c0_39, %c0_40] : memref<128x64xbf16, #tpu.memory_space<vmem>>, vector<128x64xbf16>
    %65 = arith.truncf %63 : vector<24x128xf32> to vector<24x128xbf16>
    %cst_41 = arith.constant dense<0.000000e+00> : vector<24x64xf32>
    %66 = tpu.matmul %65, %64, %cst_41 {dimension_numbers = #tpu.dot_dimension_numbers<[1], [0], [0], [1], [0, 0, 1, 1], [], []>} : vector<24x128xbf16>, vector<128x64xbf16>, vector<24x64xf32> -> vector<24x64xf32>
    %67 = vector.extract_strided_slice %66 {offsets = [0, 0], sizes = [24, 32], strides = [1, 1]} : vector<24x64xf32> to vector<24x32xf32>
    %68 = vector.extract_strided_slice %66 {offsets = [0, 32], sizes = [24, 32], strides = [1, 1]} : vector<24x64xf32> to vector<24x32xf32>
    %cst_42 = arith.constant dense<0.000000e+00> : vector<16x32xf32>
    %69 = tpu.matmul %39, %4, %cst_42 {dimension_numbers = #tpu.dot_dimension_numbers<[1], [0], [0], [1], [0, 0, 1, 1], [], []>} : vector<16x32xf32>, vector<32x32xf32>, vector<16x32xf32> -> vector<16x32xf32>
    %70 = arith.mulf %39, %6 : vector<16x32xf32>
    %71 = arith.mulf %69, %8 : vector<16x32xf32>
    %72 = arith.addf %70, %71 : vector<16x32xf32>
    %cst_43 = arith.constant dense<0.000000e+00> : vector<24x32xf32>
    %73 = tpu.matmul %67, %4, %cst_43 {dimension_numbers = #tpu.dot_dimension_numbers<[1], [0], [0], [1], [0, 0, 1, 1], [], []>} : vector<24x32xf32>, vector<32x32xf32>, vector<24x32xf32> -> vector<24x32xf32>
    %74 = arith.mulf %67, %10 : vector<24x32xf32>
    %75 = arith.mulf %73, %12 : vector<24x32xf32>
    %76 = arith.addf %74, %75 : vector<24x32xf32>
    %cst_44 = arith.constant dense<0.000000e+00> : vector<24x32xf32>
    %77 = tpu.matmul %68, %4, %cst_44 {dimension_numbers = #tpu.dot_dimension_numbers<[1], [0], [0], [1], [0, 0, 1, 1], [], []>} : vector<24x32xf32>, vector<32x32xf32>, vector<24x32xf32> -> vector<24x32xf32>
    %78 = arith.mulf %68, %10 : vector<24x32xf32>
    %79 = arith.mulf %77, %12 : vector<24x32xf32>
    %80 = arith.addf %78, %79 : vector<24x32xf32>
    %c0_45 = arith.constant 0 : index
    %c0_46 = arith.constant 0 : index
    %c0_47 = arith.constant 0 : index
    %81 = vector.load %arg7[%c0_45, %c0_46, %c0_47] : memref<1x1x24xf32, #tpu.memory_space<vmem>>, vector<1x1x24xf32>
    %82 = vector.shape_cast %81 : vector<1x1x24xf32> to vector<1x24xf32>
    %83 = arith.truncf %72 : vector<16x32xf32> to vector<16x32xbf16>
    %84 = arith.truncf %76 : vector<24x32xf32> to vector<24x32xbf16>
    %85 = arith.truncf %80 : vector<24x32xf32> to vector<24x32xbf16>
    %cst_48 = arith.constant dense<0.000000e+00> : vector<16x24xf32>
    %86 = tpu.matmul %83, %84, %cst_48 {dimension_numbers = #tpu.dot_dimension_numbers<[1], [1], [0], [0], [0, 0, 1, 0], [], []>} : vector<16x32xbf16>, vector<24x32xbf16>, vector<16x24xf32> -> vector<16x24xf32>
    %cst_49 = arith.constant 0.176776692 : f32
    %87 = vector.broadcast %cst_49 : f32 to vector<16x24xf32>
    %88 = arith.mulf %86, %87 : vector<16x24xf32>
    %cst_50 = arith.constant 5.000000e-01 : f32
    %89 = vector.broadcast %cst_50 : f32 to vector<1x24xf32>
    %90 = arith.cmpf ogt, %82, %89 : vector<1x24xf32>
    %cst_51 = arith.constant -1.000000e+30 : f32
    %91 = vector.shape_cast %90 : vector<1x24xi1> to vector<1x24xi1>
    %92 = vector.broadcast %91 : vector<1x24xi1> to vector<16x24xi1>
    %93 = vector.broadcast %cst_51 : f32 to vector<16x24xf32>
    %94 = arith.select %92, %88, %93 : vector<16x24xi1>, vector<16x24xf32>
    %cst_52 = arith.constant dense<0xFF800000> : vector<16xf32>
    %95 = vector.multi_reduction <maximumf>, %94, %cst_52 [1] : vector<16x24xf32> to vector<16xf32>
    %96 = vector.shape_cast %95 : vector<16xf32> to vector<16x1xf32>
    %97 = vector.broadcast %96 : vector<16x1xf32> to vector<16x24xf32>
    %98 = arith.subf %94, %97 : vector<16x24xf32>
    %99 = math.exp %98 : vector<16x24xf32>
    %cst_53 = arith.constant dense<0.000000e+00> : vector<16xf32>
    %100 = vector.multi_reduction <add>, %99, %cst_53 [1] : vector<16x24xf32> to vector<16xf32>
    %101 = vector.shape_cast %100 : vector<16xf32> to vector<16x1xf32>
    %102 = tpu.reciprocal %101 {approx = true} : vector<16x1xf32> -> vector<16x1xf32>
    %103 = vector.broadcast %102 : vector<16x1xf32> to vector<16x24xf32>
    %104 = arith.mulf %99, %103 : vector<16x24xf32>
    %105 = arith.truncf %104 : vector<16x24xf32> to vector<16x24xbf16>
    %cst_54 = arith.constant dense<0.000000e+00> : vector<16x32xf32>
    %106 = tpu.matmul %105, %85, %cst_54 {dimension_numbers = #tpu.dot_dimension_numbers<[1], [0], [0], [1], [0, 0, 1, 1], [], []>} : vector<16x24xbf16>, vector<24x32xbf16>, vector<16x32xf32> -> vector<16x32xf32>
    %cst_55 = arith.constant dense<0.000000e+00> : vector<16x32xf32>
    %107 = tpu.matmul %106, %4, %cst_55 {dimension_numbers = #tpu.dot_dimension_numbers<[1], [0], [0], [1], [0, 0, 1, 1], [], []>} : vector<16x32xf32>, vector<32x32xf32>, vector<16x32xf32> -> vector<16x32xf32>
    %108 = arith.mulf %106, %6 : vector<16x32xf32>
    %109 = arith.mulf %107, %8 : vector<16x32xf32>
    %110 = arith.subf %108, %109 : vector<16x32xf32>
    %c0_56 = arith.constant 0 : index
    %c0_57 = arith.constant 0 : index
    %111 = vector.load %arg15[%c0_56, %c0_57] : memref<32x128xbf16, #tpu.memory_space<vmem>>, vector<32x128xbf16>
    %112 = arith.truncf %110 : vector<16x32xf32> to vector<16x32xbf16>
    %cst_58 = arith.constant dense<0.000000e+00> : vector<16x128xf32>
    %113 = tpu.matmul %112, %111, %cst_58 {dimension_numbers = #tpu.dot_dimension_numbers<[1], [0], [0], [1], [0, 0, 1, 1], [], []>} : vector<16x32xbf16>, vector<32x128xbf16>, vector<16x128xf32> -> vector<16x128xf32>
    %114 = arith.addf %1, %113 : vector<16x128xf32>
    %c0_59 = arith.constant 0 : index
    %c0_60 = arith.constant 0 : index
    %115 = vector.load %arg16[%c0_59, %c0_60] : memref<1x128xf32, #tpu.memory_space<vmem>>, vector<1x128xf32>
    %116 = vector.broadcast %115 : vector<1x128xf32> to vector<16x128xf32>
    %117 = arith.addf %114, %116 : vector<16x128xf32>
    %c0_61 = arith.constant 0 : index
    %c0_62 = arith.constant 0 : index
    %118 = vector.load %arg17[%c0_61, %c0_62] : memref<1x128xf32, #tpu.memory_space<vmem>>, vector<1x128xf32>
    %c0_63 = arith.constant 0 : index
    %c0_64 = arith.constant 0 : index
    %119 = vector.load %arg18[%c0_63, %c0_64] : memref<1x128xf32, #tpu.memory_space<vmem>>, vector<1x128xf32>
    %c0_65 = arith.constant 0 : index
    %c0_66 = arith.constant 0 : index
    %120 = vector.load %arg19[%c0_65, %c0_66] : memref<128x1024xbf16, #tpu.memory_space<vmem>>, vector<128x1024xbf16>
    %c0_67 = arith.constant 0 : index
    %c0_68 = arith.constant 0 : index
    %121 = vector.load %arg20[%c0_67, %c0_68] : memref<1x1024xf32, #tpu.memory_space<vmem>>, vector<1x1024xf32>
    %c0_69 = arith.constant 0 : index
    %c0_70 = arith.constant 0 : index
    %122 = vector.load %arg21[%c0_69, %c0_70] : memref<512x128xbf16, #tpu.memory_space<vmem>>, vector<512x128xbf16>
    %c0_71 = arith.constant 0 : index
    %c0_72 = arith.constant 0 : index
    %123 = vector.load %arg22[%c0_71, %c0_72] : memref<1x128xf32, #tpu.memory_space<vmem>>, vector<1x128xf32>
    %cst_73 = arith.constant dense<0.000000e+00> : vector<16xf32>
    %124 = vector.multi_reduction <add>, %117, %cst_73 [1] : vector<16x128xf32> to vector<16xf32>
    %125 = vector.shape_cast %124 : vector<16xf32> to vector<16x1xf32>
    %cst_74 = arith.constant 1.280000e+02 : f32
    %126 = vector.broadcast %cst_74 : f32 to vector<16x1xf32>
    %127 = arith.divf %125, %126 : vector<16x1xf32>
    %128 = vector.broadcast %127 : vector<16x1xf32> to vector<16x128xf32>
    %129 = arith.subf %117, %128 : vector<16x128xf32>
    %130 = arith.mulf %129, %129 : vector<16x128xf32>
    %cst_75 = arith.constant dense<0.000000e+00> : vector<16xf32>
    %131 = vector.multi_reduction <add>, %130, %cst_75 [1] : vector<16x128xf32> to vector<16xf32>
    %132 = vector.shape_cast %131 : vector<16xf32> to vector<16x1xf32>
    %cst_76 = arith.constant 1.280000e+02 : f32
    %133 = vector.broadcast %cst_76 : f32 to vector<16x1xf32>
    %134 = arith.divf %132, %133 : vector<16x1xf32>
    %135 = vector.broadcast %127 : vector<16x1xf32> to vector<16x128xf32>
    %136 = arith.subf %117, %135 : vector<16x128xf32>
    %cst_77 = arith.constant 9.99999974E-6 : f32
    %137 = vector.broadcast %cst_77 : f32 to vector<16x1xf32>
    %138 = arith.addf %134, %137 : vector<16x1xf32>
    %139 = math.rsqrt %138 : vector<16x1xf32>
    %140 = vector.broadcast %139 : vector<16x1xf32> to vector<16x128xf32>
    %141 = arith.mulf %136, %140 : vector<16x128xf32>
    %142 = vector.broadcast %118 : vector<1x128xf32> to vector<16x128xf32>
    %143 = arith.mulf %141, %142 : vector<16x128xf32>
    %144 = vector.broadcast %119 : vector<1x128xf32> to vector<16x128xf32>
    %145 = arith.addf %143, %144 : vector<16x128xf32>
    %146 = arith.truncf %145 : vector<16x128xf32> to vector<16x128xbf16>
    %cst_78 = arith.constant dense<0.000000e+00> : vector<16x1024xf32>
    %147 = tpu.matmul %146, %120, %cst_78 {dimension_numbers = #tpu.dot_dimension_numbers<[1], [0], [0], [1], [0, 0, 1, 1], [], []>} : vector<16x128xbf16>, vector<128x1024xbf16>, vector<16x1024xf32> -> vector<16x1024xf32>
    %148 = vector.broadcast %121 : vector<1x1024xf32> to vector<16x1024xf32>
    %149 = arith.addf %147, %148 : vector<16x1024xf32>
    %150 = vector.extract_strided_slice %149 {offsets = [0, 0], sizes = [16, 512], strides = [1, 1]} : vector<16x1024xf32> to vector<16x512xf32>
    %151 = vector.extract_strided_slice %149 {offsets = [0, 512], sizes = [16, 512], strides = [1, 1]} : vector<16x1024xf32> to vector<16x512xf32>
    %152 = arith.mulf %151, %151 : vector<16x512xf32>
    %153 = arith.mulf %151, %152 : vector<16x512xf32>
    %cst_79 = arith.constant 4.471500e-02 : f32
    %154 = vector.broadcast %cst_79 : f32 to vector<16x512xf32>
    %155 = arith.mulf %154, %153 : vector<16x512xf32>
    %156 = arith.addf %151, %155 : vector<16x512xf32>
    %cst_80 = arith.constant 0.797884583 : f32
    %157 = vector.broadcast %cst_80 : f32 to vector<16x512xf32>
    %158 = arith.mulf %157, %156 : vector<16x512xf32>
    %159 = math.tanh %158 : vector<16x512xf32>
    %cst_81 = arith.constant 1.000000e+00 : f32
    %160 = vector.broadcast %cst_81 : f32 to vector<16x512xf32>
    %161 = arith.addf %160, %159 : vector<16x512xf32>
    %cst_82 = arith.constant 5.000000e-01 : f32
    %162 = vector.broadcast %cst_82 : f32 to vector<16x512xf32>
    %163 = arith.mulf %162, %161 : vector<16x512xf32>
    %164 = arith.mulf %151, %163 : vector<16x512xf32>
    %165 = arith.mulf %150, %164 : vector<16x512xf32>
    %166 = arith.truncf %165 : vector<16x512xf32> to vector<16x512xbf16>
    %cst_83 = arith.constant dense<0.000000e+00> : vector<16x128xf32>
    %167 = tpu.matmul %166, %122, %cst_83 {dimension_numbers = #tpu.dot_dimension_numbers<[1], [0], [0], [1], [0, 0, 1, 1], [], []>} : vector<16x512xbf16>, vector<512x128xbf16>, vector<16x128xf32> -> vector<16x128xf32>
    %168 = vector.broadcast %123 : vector<1x128xf32> to vector<16x128xf32>
    %169 = arith.addf %167, %168 : vector<16x128xf32>
    %170 = arith.addf %117, %169 : vector<16x128xf32>
    %c0_84 = arith.constant 0 : index
    %c0_85 = arith.constant 0 : index
    %c0_86 = arith.constant 0 : index
    %171 = vector.load %arg23[%c0_84, %c0_85, %c0_86] : memref<1x16x128xf32, #tpu.memory_space<vmem>>, vector<1x16x128xf32>
    %172 = vector.shape_cast %171 : vector<1x16x128xf32> to vector<16x128xf32>
    %173 = vector.shape_cast %170 : vector<16x128xf32> to vector<1x16x128xf32>
    tpu.vector_store %arg23[%c0_84, %c0_85, %c0_86], %173 {strides = array<i32>} : memref<1x16x128xf32, #tpu.memory_space<vmem>>, vector<1x16x128xf32>,
    return
  }
  func.func @transform_0(%arg0: i32) -> (i32, i32, i32) {
    %c0_i32 = arith.constant 0 : i32
    %c0_i32_0 = arith.constant 0 : i32
    %c0_i32_1 = arith.constant 0 : i32
    return %arg0, %c0_i32, %c0_i32_0 : i32, i32, i32
  }
  func.func @transform_1(%arg0: i32) -> (i32, i32, i32) {
    %c0_i32 = arith.constant 0 : i32
    %c0_i32_0 = arith.constant 0 : i32
    %c0_i32_1 = arith.constant 0 : i32
    return %arg0, %c0_i32, %c0_i32_0 : i32, i32, i32
  }
  func.func @transform_2(%arg0: i32) -> (i32, i32, i32) {
    %c0_i32 = arith.constant 0 : i32
    %c0_i32_0 = arith.constant 0 : i32
    %c0_i32_1 = arith.constant 0 : i32
    return %arg0, %c0_i32, %c0_i32_0 : i32, i32, i32
  }
  func.func @transform_3(%arg0: i32) -> (i32, i32, i32) {
    %c0_i32 = arith.constant 0 : i32
    %c0_i32_0 = arith.constant 0 : i32
    %c0_i32_1 = arith.constant 0 : i32
    return %arg0, %c0_i32, %c0_i32_0 : i32, i32, i32
  }
  func.func @transform_4(%arg0: i32) -> (i32, i32, i32) {
    %c0_i32 = arith.constant 0 : i32
    %c0_i32_0 = arith.constant 0 : i32
    %c0_i32_1 = arith.constant 0 : i32
    return %arg0, %c0_i32, %c0_i32_0 : i32, i32, i32
  }
  func.func @transform_5(%arg0: i32) -> (i32, i32, i32) {
    %c0_i32 = arith.constant 0 : i32
    %c0_i32_0 = arith.constant 0 : i32
    %c0_i32_1 = arith.constant 0 : i32
    return %arg0, %c0_i32, %c0_i32_0 : i32, i32, i32
  }
  func.func @transform_6(%arg0: i32) -> (i32, i32, i32) {
    %c0_i32 = arith.constant 0 : i32
    %c0_i32_0 = arith.constant 0 : i32
    %c0_i32_1 = arith.constant 0 : i32
    return %arg0, %c0_i32, %c0_i32_0 : i32, i32, i32
  }
  func.func @transform_7(%arg0: i32) -> (i32, i32) {
    %c0_i32 = arith.constant 0 : i32
    %c0_i32_0 = arith.constant 0 : i32
    %c0_i32_1 = arith.constant 0 : i32
    return %c0_i32, %c0_i32_0 : i32, i32
  }
  func.func @transform_8(%arg0: i32) -> (i32, i32) {
    %c0_i32 = arith.constant 0 : i32
    %c0_i32_0 = arith.constant 0 : i32
    %c0_i32_1 = arith.constant 0 : i32
    return %c0_i32, %c0_i32_0 : i32, i32
  }
  func.func @transform_9(%arg0: i32) -> (i32, i32) {
    %c0_i32 = arith.constant 0 : i32
    %c0_i32_0 = arith.constant 0 : i32
    %c0_i32_1 = arith.constant 0 : i32
    return %c0_i32, %c0_i32_0 : i32, i32
  }
  func.func @transform_10(%arg0: i32) -> (i32, i32) {
    %c0_i32 = arith.constant 0 : i32
    %c0_i32_0 = arith.constant 0 : i32
    %c0_i32_1 = arith.constant 0 : i32
    return %c0_i32, %c0_i32_0 : i32, i32
  }
  func.func @transform_11(%arg0: i32) -> (i32, i32) {
    %c0_i32 = arith.constant 0 : i32
    %c0_i32_0 = arith.constant 0 : i32
    %c0_i32_1 = arith.constant 0 : i32
    return %c0_i32, %c0_i32_0 : i32, i32
  }
  func.func @transform_12(%arg0: i32) -> (i32, i32) {
    %c0_i32 = arith.constant 0 : i32
    %c0_i32_0 = arith.constant 0 : i32
    %c0_i32_1 = arith.constant 0 : i32
    return %c0_i32, %c0_i32_0 : i32, i32
  }
  func.func @transform_13(%arg0: i32) -> (i32, i32) {
    %c0_i32 = arith.constant 0 : i32
    %c0_i32_0 = arith.constant 0 : i32
    %c0_i32_1 = arith.constant 0 : i32
    return %c0_i32, %c0_i32_0 : i32, i32
  }
  func.func @transform_14(%arg0: i32) -> (i32, i32) {
    %c0_i32 = arith.constant 0 : i32
    %c0_i32_0 = arith.constant 0 : i32
    %c0_i32_1 = arith.constant 0 : i32
    return %c0_i32, %c0_i32_0 : i32, i32
  }
  func.func @transform_15(%arg0: i32) -> (i32, i32) {
    %c0_i32 = arith.constant 0 : i32
    %c0_i32_0 = arith.constant 0 : i32
    %c0_i32_1 = arith.constant 0 : i32
    return %c0_i32, %c0_i32_0 : i32, i32
  }
  func.func @transform_16(%arg0: i32) -> (i32, i32) {
    %c0_i32 = arith.constant 0 : i32
    %c0_i32_0 = arith.constant 0 : i32
    %c0_i32_1 = arith.constant 0 : i32
    return %c0_i32, %c0_i32_0 : i32, i32
  }
  func.func @transform_17(%arg0: i32) -> (i32, i32) {
    %c0_i32 = arith.constant 0 : i32
    %c0_i32_0 = arith.constant 0 : i32
    %c0_i32_1 = arith.constant 0 : i32
    return %c0_i32, %c0_i32_0 : i32, i32
  }
  func.func @transform_18(%arg0: i32) -> (i32, i32) {
    %c0_i32 = arith.constant 0 : i32
    %c0_i32_0 = arith.constant 0 : i32
    %c0_i32_1 = arith.constant 0 : i32
    return %c0_i32, %c0_i32_0 : i32, i32
  }
  func.func @transform_19(%arg0: i32) -> (i32, i32) {
    %c0_i32 = arith.constant 0 : i32
    %c0_i32_0 = arith.constant 0 : i32
    %c0_i32_1 = arith.constant 0 : i32
    return %c0_i32, %c0_i32_0 : i32, i32
  }
  func.func @transform_20(%arg0: i32) -> (i32, i32) {
    %c0_i32 = arith.constant 0 : i32
    %c0_i32_0 = arith.constant 0 : i32
    %c0_i32_1 = arith.constant 0 : i32
    return %c0_i32, %c0_i32_0 : i32, i32
  }
  func.func @transform_21(%arg0: i32) -> (i32, i32) {
    %c0_i32 = arith.constant 0 : i32
    %c0_i32_0 = arith.constant 0 : i32
    %c0_i32_1 = arith.constant 0 : i32
    return %c0_i32, %c0_i32_0 : i32, i32
  }
  func.func @transform_22(%arg0: i32) -> (i32, i32, i32) {
    %c0_i32 = arith.constant 0 : i32
    %c0_i32_0 = arith.constant 0 : i32
    %c0_i32_1 = arith.constant 0 : i32
    return %arg0, %c0_i32, %c0_i32_0 : i32, i32, i32
  }
}

</mosaic_0001>

<bundles_post_ra>
// kernel: tpu_custom_call.1
= control target key start
LH: loop header
LB: loop body
LE: loop exit
PB: predicated region body
PF: predicated region fallthrough
CT: control target
= control target key end

     0   :  { %s5244_s0 = inlined_call_operand.hbm [shape: f32[2,16,128], index: 0, kind: input, shape index: {}]   ;;  %s5245_s1 = inlined_call_operand.vmem [shape: f32[2,24,128], index: 1, kind: input, shape index: {}]   ;;  %s5246_s2 = inlined_call_operand.hbm [shape: f32[2,16,32], index: 2, kind: input, shape index: {}]   ;;  %s5247_s3 = inlined_call_operand.hbm [shape: f32[2,16,32], index: 3, kind: input, shape index: {}]   ;;  %s5248_s4 = inlined_call_operand.vmem [shape: f32[2,24,32], index: 4, kind: input, shape index: {}]   ;;  %s5249_s5 = inlined_call_operand.vmem [shape: f32[2,24,32], index: 5, kind: input, shape index: {}]   ;;  %s5250_s6 = inlined_call_operand.hbm [shape: f32[2,1,24], index: 6, kind: input, shape index: {}]   ;;  %s5251_s7 = inlined_call_operand.hbm [shape: f32[32,32], index: 7, kind: input, shape index: {}]   ;;  %s5252_s8 = inlined_call_operand.vmem [shape: f32[1,128], index: 8, kind: input, shape index: {}]   ;;  %s5253_s9 = inlined_call_operand.hbm [shape: f32[1,128], index: 9, kind: input, shape index: {}]   ;;  %s5254_s10 = inlined_call_operand.hbm [shape: f32[1,128], index: 10, kind: input, shape index: {}]   ;;  %s5255_s11 = inlined_call_operand.hbm [shape: f32[1,128], index: 11, kind: input, shape index: {}]   ;;  %s5256_s12 = inlined_call_operand.vmem [shape: bf16[128,32], index: 12, kind: input, shape index: {}]   ;;  %s5257_s13 = inlined_call_operand.vmem [shape: bf16[128,64], index: 13, kind: input, shape index: {}]   ;;  %s5258_s14 = inlined_call_operand.vmem [shape: bf16[32,128], index: 14, kind: input, shape index: {}]   ;;  %s5259_s15 = inlined_call_operand.vmem [shape: f32[1,128], index: 15, kind: input, shape index: {}]   ;;  %s5260_s16 = inlined_call_operand.vmem [shape: f32[1,128], index: 16, kind: input, shape index: {}]   ;;  %s5261_s17 = inlined_call_operand.vmem [shape: f32[1,128], index: 17, kind: input, shape index: {}]   ;;  %s5262_s18 = inlined_call_operand.hbm [shape: bf16[128,1024], index: 18, kind: input, shape index: {}]   ;;  %s5263_s19 = inlined_call_operand.vmem [shape: f32[1,1024], index: 19, kind: input, shape index: {}]   ;;  %s5264_s20 = inlined_call_operand.hbm [shape: bf16[512,128], index: 20, kind: input, shape index: {}]   ;;  %s5265_s21 = inlined_call_operand.vmem [shape: f32[1,128], index: 21, kind: input, shape index: {}]   ;;  %s5266_s22 = inlined_call_operand.hbm [shape: f32[2,16,128], index: 22, kind: output, shape index: {}]  }
   0x1   :  { %5301 = sst [smem:[#allocation34_spill]] %s5244_s0 }
   0x2   :  { %5302 = sst [smem:[#allocation35_spill]] %s5245_s1 }
   0x3   :  { %5303 = sst [smem:[#allocation36_spill]] %s5246_s2 }
   0x4   :  { %5304 = sst [smem:[#allocation37_spill]] %s5247_s3 }
   0x5   :  { %5305 = sst [smem:[#allocation38_spill]] %s5248_s4 }
   0x6   :  { %5306 = sst [smem:[#allocation39_spill]] %s5249_s5 }
   0x7   :  { %5307 = sst [smem:[#allocation40_spill]] %s5250_s6 }
   0x8   :  { %5308 = sst [smem:[#allocation41_spill]] %s5251_s7 }
   0x9   :  { %5309 = sst [smem:[#allocation42_spill]] %s5252_s8 }
   0xa   :  { %5310 = sst [smem:[#allocation43_spill]] %s5253_s9 }
   0xb   :  { %5311 = sst [smem:[#allocation44_spill]] %s5254_s10 }
   0xc   :  { %5312 = sst [smem:[#allocation45_spill]] %s5255_s11 }
   0xd   :  { %5313 = sst [smem:[#allocation46_spill]] %s5256_s12 }
   0xe   :  { %5314 = sst [smem:[#allocation47_spill]] %s5257_s13 }
   0xf   :  { %5315 = sst [smem:[#allocation48_spill]] %s5258_s14 }
  0x10   :  { %5316 = sst [smem:[#allocation49_spill]] %s5259_s15 }
  0x11   :  { %5317 = sst [smem:[#allocation50_spill]] %s5260_s16 }
  0x12   :  { %5318 = sst [smem:[#allocation51_spill]] %s5261_s17 }
  0x13   :  { %5319 = sst [smem:[#allocation52_spill]] %s5263_s19 }
  0x14   :  { %5320 = sst [smem:[#allocation53_spill]] %s5265_s21 }
  0x15   :  { %5321 = sst [smem:[#allocation54_spill]] %s5266_s22 }
  0x16   :  { %27 = vsyncpa [#allocation3], 0 }
  0x17   :  { %29 = vsyncpa [#allocation3 + $0x1], 0 }
  0x18   :  { %30 = vsyncpa [#allocation6], 0 }
  0x19   :  { %32 = vsyncpa [#allocation6 + $0x1], 0 }
  0x1a   :  { %33 = vsyncpa [#allocation9], 0 }
  0x1b   :  { %35 = vsyncpa [#allocation9 + $0x1], 0 }
  0x1c   :  { %36 = vsyncpa [#allocation12], 0 }
  0x1d   :  { %37 = vsyncpa [#allocation15], 0 }
  0x1e   :  { %38 = vsyncpa [#allocation18], 0 }
  0x1f   :  { %39 = vsyncpa [#allocation4], 0 }
  0x20   :  { %41 = vsyncpa [#allocation4 + $0x1], 0  ;;  %s4387_s3 = smov 0   ;;  %s4389_s28 = smov 0  }
  0x21   :  { %s4391_s29 = smov 0   ;;  %s4393_s30 = smov 0  }
  0x22 LB: > { %5322 = sst [smem:[#allocation28_spill]] %s4233_s3  ;;  %s4247_s4 = smov [#allocation10]   ;;  %s4245_s30 = sphi %s4393_s30, %s5381_s30   ;;  %s4241_s29 = sphi %s4391_s29, %s5383_s29   ;;  %s4237_s28 = sphi %s4389_s28, %s5385_s28   ;;  %s4233_s3 = sphi %s4387_s3, %s5384_s3  }
  0x23   : > { %5323 = sst [smem:[#allocation29_spill]] %s4241_s29  ;;  %s587_s0 = sshll.u32 %s4247_s4, 4  ;;  %s4413_s0 = int_to_ptr.vmem [resolvable:$true] %s587_s0 }
  0x24   : > { %s4408_s23 = sadd.s32 4294967295, %s4245_s30   ;;  %p3220_p0 = scmp.ge.s32.totalorder %s4245_s30, 1 }
  0x25   : > { %p5282_p1 = scmp.eq.s32.totalorder %s4408_s23, 0  ;;  %p575_p2 = scmp.lt.s32.totalorder %s4245_s30, 3 }
  0x26   : > { %s4248_s5 = smov [#allocation11]   ;;  %s4249_s25 = smov [#allocation14]  }
  0x27   : > { %p4415_p3 = pnand %p3220_p0, %p575_p2  ;;  %s604_s24 = sshll.u32 %s4248_s5, 4  ;;  %s4428_s24 = int_to_ptr.vmem [resolvable:$true] %s604_s24 }
  0x28   : > { %s626_s26 = sshll.u32 %s4249_s25, 4  ;;  %s5326_s7 = sld [smem:[#allocation41_spill]]  ;;  %s4430_s26 = int_to_ptr.vmem [resolvable:$true] %s626_s26 }
  0x29   : > { %s5324_s1 = scalar_select %p4415_p3, 1, 0 }
  0x2a   : > { %p3677_p5 = pneg %p4415_p3 }
  0x2c   : > { %p4424_p6 = pnand %p3677_p5, %p5282_p1 }
  0x2e   : > { %s5325_s6 = scalar_select %p4424_p6, 1, 0 }
  0x2f   : > { %s3867_s4 = scalar_lea.hbm %s5326_s7, 512  ;;  %p4440_p8 = pneg %p4424_p6 }
  0x30   : > { %p3868_p7 = scmp.ne.s32.totalorder %s5326_s7, %s3867_s4  ;;  %p3874_p11 = scmp.lt.u32.totalorder %s3867_s4, %s5326_s7 }
  0x31   : > { %s5327_s5 = scalar_select %p4440_p8, 1, 0 }
  0x32   : > { %p3870_p9 = pnand %p4440_p8, %p3868_p7 }
  0x34   : > { %p3871_p10 = pneg %p3870_p9 }
  0x36   : > { %p3876_p12 = pnand %p3874_p11, %p3871_p10 }
  0x38   : > { %3879 = shalt.err (!%p3876_p12)
}
  0x39   : > { %s3880_s21 = scalar_lea.vmem %s4413_s0, 512  ;;  %p3888_p5 = scmp.lt.s32.totalorder %s4413_s0, %s4413_s0 }
  0x3a   : > { %p3881_p13 = scmp.ne.s32.totalorder %s4413_s0, %s3880_s21  ;;  %p3889_p4 = scmp.lt.s32.totalorder %s3880_s21, %s3880_s21 }
  0x3c   : > { %p3883_p0 = pnand %p3881_p13, %p4440_p8  ;;  %p3890_p7 = por %p3889_p4, %p3888_p5 }
  0x3e   : > { %p3884_p2 = pneg %p3883_p0 }
  0x40   : > { %p3891_p9 = pnand %p3890_p7, %p3884_p2 }
  0x42   : > { %3894 = shalt.err (!%p3891_p9)
}
  0x43   : > { %s5274_s22 = smov 128   ;;  %s5276_s19 = smov 8  }
  0x44   : > { %3680 = dma.hbm_to_vmem [thread:$0]  (!%p4424_p6), %s5326_s7, 512, %s4413_s0, [#allocation9], %s5274_s22, %s5274_s22, %s5276_s19  }
  0x45   : > { %s5328_s9 = sld [smem:[#allocation43_spill]] }
  0x4b   : > { %s3895_s21 = scalar_lea.hbm %s5328_s9, 16 }
  0x4c   : > { %p3896_p4 = scmp.ne.s32.totalorder %s5328_s9, %s3895_s21  ;;  %p3902_p12 = scmp.lt.u32.totalorder %s3895_s21, %s5328_s9 }
  0x4e   : > { %p3898_p10 = pnand %p3896_p4, %p4440_p8 }
  0x50   : > { %p3899_p11 = pneg %p3898_p10 }
  0x52   : > { %p3904_p13 = pnand %p3902_p12, %p3899_p11 }
  0x54   : > { %3907 = shalt.err (!%p3904_p13)
}
  0x55   : > { %s3908_s0 = scalar_lea.vmem %s4428_s24, 16  ;;  %s3915_s16 = scalar_lea.vmem %s4428_s24, 32 }
  0x56   : > { %p3909_p0 = scmp.ne.s32.totalorder %s4428_s24, %s3908_s0  ;;  %p3916_p7 = scmp.lt.s32.totalorder %s4428_s24, %s4428_s24 }
  0x57   : > { %p3917_p9 = scmp.lt.s32.totalorder %s3915_s16, %s3908_s0 }
  0x58   : > { %p3911_p2 = pnand %p3909_p0, %p4440_p8 }
  0x59   : > { %p3918_p4 = por %p3917_p9, %p3916_p7 }
  0x5a   : > { %p3912_p5 = pneg %p3911_p2 }
  0x5c   : > { %p3919_p10 = pnand %p3918_p4, %p3912_p5 }
  0x5e   : > { %3922 = shalt.err (!%p3919_p10)
}
  0x5f   : > { %3683 = dma.hbm_to_vmem [thread:$0]  (!%p4424_p6), %s5328_s9, 16, %s4428_s24, [#allocation12]  }
  0x60   : > { %s5329_s11 = sld [smem:[#allocation45_spill]] }
  0x66   : > { %s3923_s27 = scalar_lea.hbm %s5329_s11, 16 }
  0x67   : > { %p3924_p11 = scmp.ne.s32.totalorder %s5329_s11, %s3923_s27  ;;  %p3930_p0 = scmp.lt.u32.totalorder %s3923_s27, %s5329_s11 }
  0x69   : > { %p3926_p12 = pnand %p3924_p11, %p4440_p8 }
  0x6b   : > { %p3927_p13 = pneg %p3926_p12 }
  0x6d   : > { %p3932_p2 = pnand %p3930_p0, %p3927_p13 }
  0x6f   : > { %3935 = shalt.err (!%p3932_p2)
}
  0x70   : > { %s3936_s24 = scalar_lea.vmem %s4430_s26, 16  ;;  %s3943_s16 = scalar_lea.vmem %s4430_s26, 32 }
  0x71   : > { %p3937_p5 = scmp.ne.s32.totalorder %s4430_s26, %s3936_s24  ;;  %p3944_p4 = scmp.lt.s32.totalorder %s4430_s26, %s4430_s26 }
  0x72   : > { %p3945_p10 = scmp.lt.s32.totalorder %s3943_s16, %s3936_s24 }
  0x73   : > { %p3939_p7 = pnand %p3937_p5, %p4440_p8 }
  0x74   : > { %p3946_p11 = por %p3945_p10, %p3944_p4 }
  0x75   : > { %p3940_p9 = pneg %p3939_p7 }
  0x77   : > { %p3947_p12 = pnand %p3946_p11, %p3940_p9 }
  0x79   : > { %3950 = shalt.err (!%p3947_p12)
}
  0x7a   : > { %3689 = dma.hbm_to_vmem [thread:$0]  (!%p4424_p6), %s5329_s11, 16, %s4430_s26, [#allocation15]  }
  0x7b   : > { %s3219_s17 = sadd.s32 4294967294, %s4245_s30   ;;  %s4514_s2 = sadd.s32 1, %s4245_s30  }
  0x7c   : > { %5330 = sst [smem:[#allocation30_spill]] %s4514_s2  ;;  %s54_s27 = sadd.s32 1, %s4241_s29 }
  0x7d   : > { %s51_s4 = ssub.s32 %s4245_s30, %s4514_s2  ;;  %p61_p13 = scmp.ne.s32.totalorder %s4241_s29, %s4237_s28 }
  0x7e   : > { %p52_p0 = scmp.eq.s32.totalorder %s51_s4, 0  ;;  %p62_p2 = scmp.eq.s32.totalorder %s4245_s30, 0 }
  0x7f   : > { %p67_p5 = scmp.ne.s32.totalorder %s4237_s28, %s4233_s3  ;;  %p562_p7 = scmp.eq.s32.totalorder %s4408_s23, 1 }
  0x80   : > { %s4526_s25 = scalar_select %p52_p0, %s4241_s29, %s54_s27  }
  0x81   : > { %p63_p9 = por %p62_p2, %p61_p13  ;;  %p4530_p4 = por %p5282_p1, %p67_p5 }
  0x82   : > { %5331 = sst [smem:[#allocation31_spill]] %s4526_s25  ;;  %p4534_p10 = por %p562_p7, %p61_p13 }
  0x83   : > { %s5332_s26 = scalar_select %p4530_p4, 1, 0 }
  0x84   : > { %s5333_s21 = scalar_select %p4534_p10, 1, 0 }
  0x85   : > { %p568_p11 = scmp.eq.s32.totalorder %s3219_s17, 1  ;;  %p3719_p12 = scmp.lt.s32.totalorder %s4245_s30, 2 }
  0x86   : > { %5334 = sst [smem:[#allocation32_spill]] %s5333_s21  ;;  %s4540_s0 = sand.u32 1, %s4241_s29  }
  0x87   : > { %p4542_p3 = por %p568_p11, %p67_p5  ;;  %s4547_s16 = sshll.u32 %s4540_s0, 4 }
  0x88   : > { %s4550_s14 = sshll.u32 %s4245_s30, 8  ;;  %p4552_p0 = pnand %p3719_p12, %p63_p9 }
  0x89   : > { %s5335_s24 = scalar_select %p4542_p3, 1, 0 }
  0x8a   : > { %s5337_s15 = scalar_select %p4552_p0, 1, 0 }
  0x8b   : > { %5336 = sst [smem:[#allocation33_spill]] %s5335_s24  ;;  %s5284_s17 = sand.u32 1, %s4245_s30  }
  0x8c   : > { %s5338_s22 = sld [smem:[#allocation36_spill]]  ;;  %s720_s7 = scalar_lea.vmem [#allocation5], %s4547_s16 }
  0x8d   : > { %s727_s9 = sshll.u32 %s720_s7, 4  ;;  %s4568_s11 = scalar_lea.sflag [#allocation6], %s5284_s17  ;;  %s4564_s9 = int_to_ptr.vmem [resolvable:$true] %s727_s9 }
  0x8e   : > { %p4574_p2 = pneg %p4552_p0 }
  0x90   : > { %s5339_s29 = scalar_select %p4574_p2, 1, 0 }
  0x92   : > { %s4561_s19 = scalar_lea.hbm %s5338_s22, %s4550_s14  ;;  %s3956_s7 = scalar_lea.hbm %s5338_s22, 512 }
  0x93   : > { %s3951_s25 = scalar_lea.hbm %s4561_s19, 256  ;;  %p3957_p9 = scmp.lt.u32.totalorder %s4561_s19, %s5338_s22 }
  0x94   : > { %p3952_p13 = scmp.ne.s32.totalorder %s4561_s19, %s3951_s25  ;;  %p3958_p11 = scmp.lt.u32.totalorder %s3956_s7, %s3951_s25 }
  0x95   : > { %p3960_p1 = scmp.lt.u32.totalorder %s3951_s25, %s4561_s19 }
  0x96   : > { %p3954_p5 = pnand %p4574_p2, %p3952_p13  ;;  %p3959_p12 = por %p3958_p11, %p3957_p9 }
  0x98   : > { %p3955_p7 = pneg %p3954_p5  ;;  %p3961_p3 = por %p3960_p1, %p3959_p12 }
  0x9a   : > { %p3962_p10 = pnand %p3961_p3, %p3955_p7 }
  0x9c   : > { %3965 = shalt.err (!%p3962_p10)
}
  0x9d   : > { %s3966_s17 = scalar_lea.vmem %s4564_s9, 256  ;;  %s4252_s27 = smov [#allocation5]  }
  0x9e   : > { %p3967_p13 = scmp.ne.s32.totalorder %s4564_s9, %s3966_s17  ;;  %s3971_s4 = sshll.u32 %s4252_s27, 4  ;;  %s3972_s4 = int_to_ptr.vmem [resolvable:$false] %s3971_s4 }
  0x9f   : > { %s3973_s2 = scalar_lea.vmem %s3972_s4, 512  ;;  %p3974_p6 = scmp.lt.s32.totalorder %s4564_s9, %s3972_s4 }
  0xa0   : > { %p3969_p5 = pnand %p3967_p13, %p4574_p2  ;;  %p3975_p8 = scmp.lt.s32.totalorder %s3973_s2, %s3966_s17 }
  0xa2   : > { %p3970_p4 = pneg %p3969_p5  ;;  %p3976_p9 = por %p3975_p8, %p3974_p6 }
  0xa4   : > { %p3977_p11 = pnand %p3976_p9, %p3970_p4 }
  0xa6   : > { %3980 = shalt.err (!%p3977_p11)
}
  0xa7   : > { %s5340_s25 = smov 8   ;;  %s5341_s24 = smov 128  }
  0xa8   : > { %3702 = dma.hbm_to_vmem [thread:$0]  (!%p4552_p0), %s4561_s19, 256, %s4564_s9, %s4568_s11, %s5341_s24, %s5341_s24, %s5340_s25  }
  0xa9   : > { %s4253_s7 = smov [#allocation13]   ;;  %s4254_s27 = smov [#allocation16]  }
  0xaa   : > { %s615_s22 = sshll.u32 %s4253_s7, 4  ;;  %s654_s3 = sshll.u32 %s4254_s27, 4  ;;  %s616_s22 = int_to_ptr.vmem [resolvable:$true] %s615_s22  ;;  %s655_s3 = int_to_ptr.vmem [resolvable:$true] %s654_s3 }
  0xab   : > { %s5342_s10 = sld [smem:[#allocation44_spill]]  ;;  %p5343_p3 = scmp.ne.s32.totalorder %s5327_s5, 0 }
  0xb1   : > { %s3981_s2 = scalar_lea.hbm %s5342_s10, 16 }
  0xb2   : > { %p3982_p1 = scmp.ne.s32.totalorder %s5342_s10, %s3981_s2  ;;  %p3988_p4 = scmp.lt.u32.totalorder %s3981_s2, %s5342_s10 }
  0xb4   : > { %p3984_p6 = pnand %p3982_p1, %p5343_p3 }
  0xb6   : > { %p3985_p8 = pneg %p3984_p6 }
  0xb8   : > { %p3990_p10 = pnand %p3988_p4, %p3985_p8 }
  0xba   : > { %3993 = shalt.err (!%p3990_p10)
}
  0xbb   : > { %s3994_s9 = scalar_lea.vmem %s616_s22, 16  ;;  %s4001_s19 = scalar_lea.vmem %s616_s22, 32 }
  0xbc   : > { %p3995_p7 = scmp.ne.s32.totalorder %s616_s22, %s3994_s9  ;;  %p4002_p5 = scmp.lt.s32.totalorder %s616_s22, %s616_s22 }
  0xbd   : > { %p4003_p9 = scmp.lt.s32.totalorder %s4001_s19, %s3994_s9 }
  0xbe   : > { %p3997_p12 = pnand %p3995_p7, %p5343_p3 }
  0xbf   : > { %p4004_p11 = por %p4003_p9, %p4002_p5 }
  0xc0   : > { %p3998_p13 = pneg %p3997_p12 }
  0xc2   : > { %p4005_p0 = pnand %p4004_p11, %p3998_p13 }
  0xc4   : > { %4008 = shalt.err (!%p4005_p0)
}
  0xc5   : > { %p5344_p1 = scmp.ne.s32.totalorder %s5325_s6, 0  ;;  %s4009_s7 = scalar_lea.hbm %s5262_s18, 8192 }
  0xc6   : > { %p4010_p6 = scmp.ne.s32.totalorder %s5262_s18, %s4009_s7  ;;  %p4016_p0 = scmp.lt.u32.totalorder %s4009_s7, %s5262_s18 }
  0xc7   : > { %3686 = dma.hbm_to_vmem [thread:$0]  (!%p5344_p1), %s5342_s10, 16, %s616_s22, [#allocation12]  }
  0xc8   : > { %p4012_p8 = pnand %p4010_p6, %p5343_p3 }
  0xca   : > { %p4013_p4 = pneg %p4012_p8 }
  0xcc   : > { %p4018_p10 = pnand %p4016_p0, %p4013_p4 }
  0xce   : > { %4021 = shalt.err (!%p4018_p10)
}
  0xcf   : > { %s4022_s9 = scalar_lea.vmem %s655_s3, 8192  ;;  %p4030_p5 = scmp.lt.s32.totalorder %s655_s3, %s655_s3 }
  0xd0   : > { %p4023_p7 = scmp.ne.s32.totalorder %s655_s3, %s4022_s9  ;;  %p4031_p9 = scmp.lt.s32.totalorder %s4022_s9, %s4022_s9 }
  0xd2   : > { %p4025_p12 = pnand %p4023_p7, %p5343_p3  ;;  %p4032_p11 = por %p4031_p9, %p4030_p5 }
  0xd4   : > { %p4026_p13 = pneg %p4025_p12 }
  0xd6   : > { %p4033_p2 = pnand %p4032_p11, %p4026_p13 }
  0xd8   : > { %4036 = shalt.err (!%p4033_p2)
}
  0xd9   : > { %s4255_s22 = smov 512   ;;  %s4256_s19 = smov 32  }
  0xda   : > { %3692 = dma.hbm_to_vmem [thread:$0]  (!%p5344_p1), %s5262_s18, 8192, %s655_s3, [#allocation15], %s4255_s22, %s4255_s22, %s4256_s19  }
  0xdb   : > { %s4257_s12 = smov [#allocation17]   ;;  %s4037_s4 = scalar_lea.hbm %s5264_s20, 4096 }
  0xdc   : > { %s670_s13 = sshll.u32 %s4257_s12, 4  ;;  %p4038_p2 = scmp.ne.s32.totalorder %s5264_s20, %s4037_s4  ;;  %s671_s13 = int_to_ptr.vmem [resolvable:$true] %s670_s13 }
  0xdd   : > { %p4044_p4 = scmp.lt.u32.totalorder %s4037_s4, %s5264_s20 }
  0xde   : > { %p4040_p6 = pnand %p4038_p2, %p5343_p3 }
  0xe0   : > { %p4041_p8 = pneg %p4040_p6 }
  0xe2   : > { %p4046_p0 = pnand %p4044_p4, %p4041_p8 }
  0xe4   : > { %4049 = shalt.err (!%p4046_p0)
}
  0xe5   : > { %s4050_s3 = scalar_lea.vmem %s671_s13, 4096  ;;  %p4058_p13 = scmp.lt.s32.totalorder %s671_s13, %s671_s13 }
  0xe6   : > { %p4051_p10 = scmp.ne.s32.totalorder %s671_s13, %s4050_s3  ;;  %p4059_p5 = scmp.lt.s32.totalorder %s4050_s3, %s4050_s3 }
  0xe8   : > { %p4053_p7 = pnand %p4051_p10, %p5343_p3  ;;  %p4060_p9 = por %p4059_p5, %p4058_p13 }
  0xea   : > { %p4054_p12 = pneg %p4053_p7 }
  0xec   : > { %p4061_p11 = pnand %p4060_p9, %p4054_p12 }
  0xee   : > { %4064 = shalt.err (!%p4061_p11)
}
  0xef   : > { %s4258_s22 = smov 64   ;;  %s4259_s10 = smov 4  }
  0xf0   : > { %3695 = dma.hbm_to_vmem [thread:$0]  (!%p5344_p1), %s5264_s20, 4096, %s671_s13, [#allocation18], %s4258_s22, %s4258_s22, %s4259_s10  }
  0xf1   : > { %s5345_s12 = sld [smem:[#allocation34_spill]]  ;;  %s691_s27 = scalar_lea.vmem [#allocation2], %s4547_s16 }
  0xf2   : > { %s698_s4 = sshll.u32 %s691_s27, 4  ;;  %s688_s17 = scalar_lea.sflag [#allocation3], %s4540_s0  ;;  %s4662_s4 = int_to_ptr.vmem [resolvable:$true] %s698_s4 }
  0xf3   : > { %p5346_p2 = scmp.ne.s32.totalorder %s5339_s29, 0 }
  0xf7   : > { %s4659_s7 = scalar_lea.hbm %s5345_s12, %s4550_s14  ;;  %s4070_s9 = scalar_lea.hbm %s5345_s12, 512 }
  0xf8   : > { %s4065_s2 = scalar_lea.hbm %s4659_s7, 256  ;;  %p4071_p1 = scmp.lt.u32.totalorder %s4659_s7, %s5345_s12 }
  0xf9   : > { %p4066_p3 = scmp.ne.s32.totalorder %s4659_s7, %s4065_s2  ;;  %p4072_p4 = scmp.lt.u32.totalorder %s4070_s9, %s4065_s2 }
  0xfa   : > { %p4074_p10 = scmp.lt.u32.totalorder %s4065_s2, %s4659_s7 }
  0xfb   : > { %p4068_p6 = pnand %p4066_p3, %p5346_p2  ;;  %p4073_p0 = por %p4072_p4, %p4071_p1 }
  0xfd   : > { %p4069_p8 = pneg %p4068_p6  ;;  %p4075_p7 = por %p4074_p10, %p4073_p0 }
  0xff   : > { %p4076_p12 = pnand %p4075_p7, %p4069_p8 }
 0x101   : > { %4079 = shalt.err (!%p4076_p12)
}
 0x102   : > { %s4080_s10 = scalar_lea.vmem %s4662_s4, 256  ;;  %s4260_s19 = smov [#allocation2]  }
 0x103   : > { %p4081_p13 = scmp.ne.s32.totalorder %s4662_s4, %s4080_s10  ;;  %s4085_s8 = sshll.u32 %s4260_s19, 4  ;;  %s4086_s8 = int_to_ptr.vmem [resolvable:$false] %s4085_s8 }
 0x104   : > { %s4087_s5 = scalar_lea.vmem %s4086_s8, 512  ;;  %p4088_p11 = scmp.lt.s32.totalorder %s4662_s4, %s4086_s8 }
 0x105   : > { %p4083_p5 = pnand %p4081_p13, %p5346_p2  ;;  %p4089_p3 = scmp.lt.s32.totalorder %s4087_s5, %s4080_s10 }
 0x107   : > { %p4084_p9 = pneg %p4083_p5  ;;  %p4090_p6 = por %p4089_p3, %p4088_p11 }
 0x109   : > { %p4091_p1 = pnand %p4090_p6, %p4084_p9 }
 0x10b   : > { %4094 = shalt.err (!%p4091_p1)
}
 0x10c   : > { %p5347_p8 = scmp.ne.s32.totalorder %s5337_s15, 0  ;;  %s5348_s2 = sld [smem:[#allocation37_spill]] }
 0x10d   : > { %s741_s13 = scalar_lea.vmem [#allocation7], %s4547_s16 }
 0x10e   : > { %3699 = dma.hbm_to_vmem [thread:$0]  (!%p5347_p8), %s4659_s7, 256, %s4662_s4, %s688_s17, %s5341_s24, %s5341_s24, %s5340_s25  }
 0x10f   : > { %s748_s9 = sshll.u32 %s741_s13, 4  ;;  %s4698_s9 = int_to_ptr.vmem [resolvable:$true] %s748_s9 }
 0x112   : > { %s4695_s6 = scalar_lea.hbm %s5348_s2, %s4550_s14  ;;  %s4100_s4 = scalar_lea.hbm %s5348_s2, 512 }
 0x113   : > { %s4095_s3 = scalar_lea.hbm %s4695_s6, 256  ;;  %p4101_p7 = scmp.lt.u32.totalorder %s4695_s6, %s5348_s2 }
 0x114   : > { %p4096_p4 = scmp.ne.s32.totalorder %s4695_s6, %s4095_s3  ;;  %p4102_p12 = scmp.lt.u32.totalorder %s4100_s4, %s4095_s3 }
 0x115   : > { %p4104_p5 = scmp.lt.u32.totalorder %s4095_s3, %s4695_s6 }
 0x116   : > { %p4098_p0 = pnand %p4096_p4, %p5346_p2  ;;  %p4103_p13 = por %p4102_p12, %p4101_p7 }
 0x118   : > { %p4099_p10 = pneg %p4098_p0  ;;  %p4105_p9 = por %p4104_p5, %p4103_p13 }
 0x11a   : > { %p4106_p11 = pnand %p4105_p9, %p4099_p10 }
 0x11c   : > { %4109 = shalt.err (!%p4106_p11)
}
 0x11d   : > { %s4110_s16 = scalar_lea.vmem %s4698_s9, 256  ;;  %s4261_s10 = smov [#allocation7]  }
 0x11e   : > { %p4111_p3 = scmp.ne.s32.totalorder %s4698_s9, %s4110_s16  ;;  %s4115_s19 = sshll.u32 %s4261_s10, 4  ;;  %s4116_s19 = int_to_ptr.vmem [resolvable:$false] %s4115_s19 }
 0x11f   : > { %s4117_s8 = scalar_lea.vmem %s4116_s19, 512  ;;  %p4118_p4 = scmp.lt.s32.totalorder %s4698_s9, %s4116_s19 }
 0x120   : > { %p4113_p6 = pnand %p4111_p3, %p5346_p2  ;;  %p4119_p0 = scmp.lt.s32.totalorder %s4117_s8, %s4110_s16 }
 0x122   : > { %p4114_p1 = pneg %p4113_p6  ;;  %p4120_p7 = por %p4119_p0, %p4118_p4 }
 0x124   : > { %p4121_p12 = pnand %p4120_p7, %p4114_p1 }
 0x126   : > { %4124 = shalt.err (!%p4121_p12)
}
 0x127   : > { %3705 = dma.hbm_to_vmem [thread:$0]  (!%p5347_p8), %s4695_s6, 256, %s4698_s9, %s4568_s11, %s5341_s24, %s5341_s24, %s5340_s25  }
 0x128   : > { %s3237_s5 = sshll.u32 %s4245_s30, 4  ;;  %s5349_s13 = sld [smem:[#allocation40_spill]] }
 0x129   : > { %s777_s22 = scalar_lea.vmem [#allocation8], %s4540_s0  ;;  %s5350_s4 = sand.u32 1, %s4245_s30  }
 0x12a   : > { %s784_s7 = sshll.u32 %s777_s22, 4  ;;  %s775_s17 = scalar_lea.sflag [#allocation9], %s5350_s4  ;;  %s785_s7 = int_to_ptr.vmem [resolvable:$true] %s784_s7 }
 0x12e   : > { %s4729_s3 = scalar_lea.hbm %s5349_s13, %s3237_s5  ;;  %s4130_s24 = scalar_lea.hbm %s5349_s13, 32 }
 0x12f   : > { %s4125_s14 = scalar_lea.hbm %s4729_s3, 16  ;;  %p4131_p9 = scmp.lt.u32.totalorder %s4729_s3, %s5349_s13 }
 0x130   : > { %p4126_p10 = scmp.ne.s32.totalorder %s4729_s3, %s4125_s14  ;;  %p4132_p11 = scmp.lt.u32.totalorder %s4130_s24, %s4125_s14 }
 0x131   : > { %p4134_p6 = scmp.lt.u32.totalorder %s4125_s14, %s4729_s3 }
 0x132   : > { %p4128_p13 = pnand %p4126_p10, %p5346_p2  ;;  %p4133_p3 = por %p4132_p11, %p4131_p9 }
 0x134   : > { %p4129_p5 = pneg %p4128_p13  ;;  %p4135_p1 = por %p4134_p6, %p4133_p3 }
 0x136   : > { %p4136_p4 = pnand %p4135_p1, %p4129_p5 }
 0x138   : > { %4139 = shalt.err (!%p4136_p4)
}
 0x139   : > { %s4140_s0 = scalar_lea.vmem %s785_s7, 16  ;;  %s4262_s16 = smov [#allocation8]  }
 0x13a   : > { %p4141_p0 = scmp.ne.s32.totalorder %s785_s7, %s4140_s0  ;;  %s4145_s10 = sshll.u32 %s4262_s16, 4  ;;  %s4146_s10 = int_to_ptr.vmem [resolvable:$false] %s4145_s10 }
 0x13b   : > { %s4147_s19 = scalar_lea.vmem %s4146_s10, 32  ;;  %p4148_p10 = scmp.lt.s32.totalorder %s785_s7, %s4146_s10 }
 0x13c   : > { %p4143_p7 = pnand %p4141_p0, %p5346_p2  ;;  %p4149_p13 = scmp.lt.s32.totalorder %s4147_s19, %s4140_s0 }
 0x13e   : > { %p4144_p12 = pneg %p4143_p7  ;;  %p4150_p8 = por %p4149_p13, %p4148_p10 }
 0x140   : > { %p4151_p9 = pnand %p4150_p8, %p4144_p12 }
 0x142   : > { %4154 = shalt.err (!%p4151_p9)
}
 0x143   : > { %p5351_p11 = scmp.ne.s32.totalorder %s5337_s15, 0  ;;  %p5352_p5 = scmp.ne.s32.totalorder %s5324_s1, 0 }
 0x144   : > { %s4754_s29 = sand.u32 (!%p5352_p5), 1, %s4237_s28   ;;  %p5353_p2 = scmp.ne.s32.totalorder (!%p5352_p5), %s5332_s26, 0 }
 0x145   : > { %3708 = dma.hbm_to_vmem [thread:$0]  (!%p5351_p11), %s4729_s3, 16, %s785_s7, %s775_s17  }
 0x146   : > { %793 = sbr.rel (%p5352_p5) target bundleno = 3151 (0xc4f), region = 108  ;;  %s4757_s8 = sshll.u32 (!%p5352_p5), %s4754_s29, 4 }
 0x147   : > { %s796_s5 = scalar_lea.sflag (!%p5352_p5), [#allocation3], %s4754_s29  ;;  %s799_s21 = scalar_lea.vmem (!%p5352_p5), [#allocation2], %s4757_s8 }
 0x14d   : > { %4200 = dma.done.wait (%p5353_p2), %s796_s5, 256  }
 0x14e   : > { %4202 = vsyncadd (%p5353_p2), %s796_s5, 4294967040  ;;  %s804_s1 = sand.u32 1, %s4408_s23   ;;  %s808_s27 = scalar_lea.vmem [#allocation5], %s4757_s8 }
 0x14f   : > { %s805_s15 = scalar_lea.sflag [#allocation6], %s804_s1 }
 0x150   : > { %4204 = dma.done.wait (%p5353_p2), %s805_s15, 512  }
 0x151   : > { %4206 = vsyncadd (%p5353_p2), %s805_s15, 4294966784  ;;  %s817_s3 = scalar_lea.vmem [#allocation7], %s4757_s8  ;;  %s823_s22 = scalar_lea.sflag [#allocation9], %s804_s1 }
 0x152   : > { %s825_s7 = scalar_lea.vmem [#allocation8], %s4754_s29 }
 0x153   : > { %4208 = dma.done.wait (%p5353_p2), %s823_s22, 16  }
 0x154   : > { %4210 = vsyncadd (%p5353_p2), %s823_s22, 4294967280  ;;  %p5354_p8 = scmp.eq.s32.totalorder %s4408_s23, 0 }
 0x156   : > { %4212 = dma.done.wait (%p5354_p8), [#allocation9], 512   ;;  %p5355_p3 = pmov %p5354_p8 }
 0x158   : > { %4214 = vsyncadd (%p5355_p3), [#allocation9], 4294966784  ;;  %p5356_p6 = pmov %p5355_p3 }
 0x159   : > { %p5357_p1 = pmov %p5355_p3 }
 0x15a   : > { %4216 = dma.done.wait (%p5356_p6), [#allocation12], 32  }
 0x15b   : > { %4218 = vsyncadd (%p5357_p1), [#allocation12], 4294967264  ;;  %p5358_p4 = pmov %p5357_p1 }
 0x15c   : > { %p5359_p0 = pmov %p5357_p1 }
 0x15d   : > { %4220 = dma.done.wait (%p5358_p4), [#allocation15], 8208  }
 0x15e   : > { %4222 = vsyncadd (%p5359_p0), [#allocation15], 4294959088  ;;  %p5360_p7 = pmov %p5359_p0 }
 0x15f   : > { %p5361_p12 = pmov %p5359_p0 }
 0x160   : > { %4224 = dma.done.wait (%p5360_p7), [#allocation18], 4096  }
 0x161   : > { %4226 = vsyncadd (%p5361_p12), [#allocation18], 4294963200  ;;  %p939_p10 = scmp.lt.s32.totalorder %s4408_s23, 1  ;;  %s5362_s11 = sld [smem:[#allocation35_spill]]  ;;  %v4803_v3 = vld [vmem:[%s799_s21] sm:$0xff]  ;;  %v4807_v4 = vld [vmem:[%s799_s21 + $0x8] sm:$0xff] }
 0x162   : > { %s5363_s9 = sld [smem:[#allocation47_spill]]  ;;  %v4263_v6 = vmov 0.0   ;;  %s5364_s10 = sld [smem:[#allocation46_spill]]  ;;  %vm4264_vm0 = vmmov 0   ;;  %v960_v42 = vld [vmem:[#allocation10] sm:$0xff]  ;;  %v961_v43 = vld [vmem:[#allocation10 + $0x8] sm:$0xff] }
 0x163   : > { %s940_s26 = scalar_select %p939_p10, %s4408_s23, 1  ;;  %3494 = vmatprep.subr.bf16.mxu0 %v4263_v6  ;;  %3510 = vmatprep.mubr.msk.bf16.mxu0 %vm4264_vm0, %v4263_v6  ;;  %v4265_v44 = vmov 0.0|0.0   ;;  %v4892_v45 = vpack.c.bf16 %v961_v43, %v960_v42  ;;  %v3262_v63 = vld [vmem:[#allocation13] ss:$0 sm:$0xff]  ;;  %vm1288_vm1 = vcmask 261120   ;;  %vm1666_vm4 = vcmask 195584  }
 0x164   : > { %s5365_s19 = sld [smem:[#allocation42_spill]]  ;;  %s4266_s5 = smov 96   ;;  %vm1700_vm5 = vcmask 1043456  }
 0x165   : > { %s4795_s4 = smul.u32 24, %s940_s26  ;;  %s5366_s15 = sld [smem:[#allocation38_spill]] }
 0x166   : > { %s5367_s14 = sld [smem:[#allocation39_spill]]  ;;  %s5369_s16 = sld [smem:[#allocation49_spill]] }
 0x167   : > { %s943_s25 = scalar_lea.vmem %s5362_s11, %s4795_s4  ;;  %s5370_s21 = sld [smem:[#allocation50_spill]] }
 0x168   : > { %v957_v0 = vld [vmem:[%s943_s25] sm:$0xff]  ;;  %v959_v1 = vld [vmem:[%s943_s25 + $0x10] sm:$0xff]  ;;  %v958_v2 = vld [vmem:[%s943_s25 + $0x8] sm:$0xff]  ;;  %s5374_s25 = sld [smem:[#allocation32_spill]]  ;;  %s3395_s6 = sshll.u32 %s4408_s23, 8 }
 0x169   : > { %1123 = vadd.xlane.f32.xlu0 %v957_v0  ;;  %1127 = vadd.xlane.f32.xlu1 %v959_v1  ;;  %v3779_v5 = vld [vmem:[%s5363_s9] sm:$0xff]   ;;  %v3781_v28 = vld [vmem:[%s5363_s9 + $0x8] sm:$0xff]   ;;  %v3783_v30 = vld [vmem:[%s5363_s9 + $0x10] sm:$0xff]   ;;  %s4269_s23 = smov [#allocation19]  }
 0x16a   : > { %3514 = vmatprep.subr.bf16.mxu1 %v3779_v5  ;;  %v3780_v27 = vld [vmem:[%s5364_s10] sm:$0xff]   ;;  %v3782_v29 = vld [vmem:[%s5364_s10 + $0x8] sm:$0xff]   ;;  %v3784_v31 = vld [vmem:[%s5364_s10 + $0x10] sm:$0xff]   ;;  %s4159_s1 = sshll.u32 %s4269_s23, 4  ;;  %s4160_s1 = int_to_ptr.vmem [resolvable:$false] %s4159_s1 }
 0x16b   : > { %3515 = vmatpush3.bf16.msra.mxu1 %v3779_v5  ;;  %3495 = vmatpush3.bf16.msra.mxu0 %v3780_v27  ;;  %v3785_v32 = vld [vmem:[%s5363_s9 + $0x18] sm:$0xff]   ;;  %v3787_v34 = vld [vmem:[%s5363_s9 + $0x20] sm:$0xff]   ;;  %v3789_v36 = vld [vmem:[%s5363_s9 + $0x28] sm:$0xff]   ;;  %s948_s22 = scalar_lea.vmem %s5366_s15, %s4795_s4  ;;  %s4161_s15 = scalar_lea.vmem %s4160_s1, 512 }
 0x16c   : > { %3516 = vmatprep.subr.bf16.mxu1 %v3781_v28  ;;  %3496 = vmatprep.subr.bf16.mxu0 %v4263_v6  ;;  %v3786_v33 = vld [vmem:[%s5364_s10 + $0x18] sm:$0xff]   ;;  %v3788_v35 = vld [vmem:[%s5364_s10 + $0x20] sm:$0xff]   ;;  %v3791_v37 = vld [vmem:[%s5363_s9 + $0x30] sm:$0xff]   ;;  %s953_s11 = scalar_lea.vmem %s5367_s14, %s4795_s4  ;;  %s5368_s4 = sld [smem:[#allocation48_spill]] }
 0x16d   : > { %1125 = vadd.xlane.f32.xlu0 %v958_v2  ;;  %976 = vadd.xlane.f32.xlu1 %v4803_v3  ;;  %v3790_v38 = vld [vmem:[%s5364_s10 + $0x28] sm:$0xff]   ;;  %v3793_v39 = vld [vmem:[%s5363_s9 + $0x38] sm:$0xff]   ;;  %v3792_v40 = vld [vmem:[%s5364_s10 + $0x30] sm:$0xff]   ;;  %s5372_s14 = sld [smem:[#allocation52_spill]] }
 0x16e   : > { %v3794_v41 = vld [vmem:[%s5364_s10 + $0x38] sm:$0xff]   ;;  %v4966_v42 = vld [vmem:[%s953_s11] sm:$0xff]  ;;  %p5376_p9 = scmp.ne.s32.totalorder %s5374_s25, 0 }
 0x16f   : > { %3517 = vmatpush3.bf16.msra.mxu1 %v3781_v28  ;;  %3497 = vmatpush3.bf16.msra.mxu0 %v3782_v29  ;;  %v963_v27 = vld [vmem:[#allocation10 + $0x18] sm:$0xff] }
 0x170   : > { %3518 = vmatprep.subr.bf16.mxu1 %v3783_v30  ;;  %3498 = vmatprep.subr.bf16.mxu0 %v4263_v6 }
 0x171   : > { %978 = vadd.xlane.f32.xlu0 %v4807_v4 }
 0x173   : > { %3519 = vmatpush3.bf16.msra.mxu1 %v3783_v30  ;;  %3499 = vmatpush3.bf16.msra.mxu0 %v3784_v31 }
 0x174   : > { %3520 = vmatprep.subr.bf16.mxu1 %v3785_v32  ;;  %3500 = vmatprep.subr.bf16.mxu0 %v4263_v6 }
 0x177   : > { %3521 = vmatpush3.bf16.msra.mxu1 %v3785_v32  ;;  %3501 = vmatpush3.bf16.msra.mxu0 %v3786_v33 }
 0x178   : > { %3522 = vmatprep.subr.bf16.mxu1 %v3787_v34  ;;  %3502 = vmatprep.subr.bf16.mxu0 %v4263_v6 }
 0x17b   : > { %3523 = vmatpush3.bf16.msra.mxu1 %v3787_v34  ;;  %3503 = vmatpush3.bf16.msra.mxu0 %v3788_v35 }
 0x17c   : > { %3524 = vmatprep.subr.bf16.mxu1 %v3789_v36  ;;  %3504 = vmatprep.subr.bf16.mxu0 %v4263_v6 }
 0x17f   : > { %3525 = vmatpush3.bf16.msra.mxu1 %v3789_v36  ;;  %3505 = vmatpush3.bf16.msra.mxu0 %v3790_v38 }
 0x180   : > { %3526 = vmatprep.subr.bf16.mxu1 %v3791_v37  ;;  %3506 = vmatprep.subr.bf16.mxu0 %v4263_v6 }
 0x183   : > { %3527 = vmatpush3.bf16.msra.mxu1 %v3791_v37  ;;  %3507 = vmatpush3.bf16.msra.mxu0 %v3792_v40 }
 0x184   : > { %3528 = vmatprep.subr.bf16.mxu1 %v3793_v39  ;;  %3508 = vmatprep.subr.bf16.mxu0 %v4263_v6 }
 0x187   : > { %3529 = vmatpush3.bf16.msra.mxu1 %v3793_v39  ;;  %3509 = vmatpush3.bf16.msra.mxu0 %v3794_v41  ;;  %v4964_v41 = vld [vmem:[%s948_s22] sm:$0xff] }
 0x188   : > { %3622 = vmatprep.subr.bf16.mxu1 %v4265_v44  ;;  %3615 = vmatprep.subr.bf16.mxu0 %v4892_v45 }
 0x1f6   : > { %v1124_v7 = vpop.xlane.xlu0 %1123  ;;  %v1128_v8 = vpop.xlane.xlu1 %1127 }
 0x1f7   : > { %v1129_v9 = vmul.f32 0.0078125, %v1124_v7  ;;  %v1131_v10 = vmul.f32 0.0078125, %v1128_v8  ;;  %v3263_v7 = vld [vmem:[#allocation14] ss:$0 sm:$0xff] }
 0x1f9   : > { %v4815_v11 = vsub.f32 %v957_v0, %v1129_v9  ;;  %v4817_v12 = vsub.f32 %v959_v1, %v1131_v10 }
 0x1fa   : > { %v1126_v13 = vpop.xlane.xlu0 %1125  ;;  %v977_v14 = vpop.xlane.xlu1 %976 }
 0x1fb   : > { %v1130_v15 = vmul.f32 0.0078125, %v1126_v13  ;;  %v1135_v16 = vmul.f32 %v4815_v11, %v4815_v11  ;;  %v981_v17 = vmul.f32 0.0078125, %v977_v14  ;;  %v1137_v20 = vmul.f32 %v4817_v12, %v4817_v12  ;;  %v3252_v14 = vld [vmem:[%s5365_s19] ss:$0 sm:$0xff]  ;;  %s5375_s19 = sld [smem:[#allocation54_spill]] }
 0x1fd   : > { %v4821_v18 = vsub.f32 %v958_v2, %v1130_v15  ;;  %1138 = vadd.xlane.f32.xlu1 %v1135_v16  ;;  %v4824_v19 = vsub.f32 %v4803_v3, %v981_v17 }
 0x1fe   : > { %v979_v21 = vpop.xlane.xlu0 %978 }
 0x1ff   : > { %v982_v22 = vmul.f32 0.0078125, %v979_v21  ;;  %v1136_v23 = vmul.f32 %v4821_v18, %v4821_v18  ;;  %v985_v25 = vmul.f32 %v4824_v19, %v4824_v19  ;;  %v3253_v21 = vld [vmem:[#allocation11] ss:$0 sm:$0xff] }
 0x201   : > { %v4831_v24 = vsub.f32 %v4807_v4, %v982_v22  ;;  %1140 = vadd.xlane.f32.xlu0 %v1136_v23  ;;  %1142 = vadd.xlane.f32.xlu1 %v1137_v20 }
 0x203   : > { %v986_v26 = vmul.f32 %v4831_v24, %v4831_v24 }
 0x205   : > { %989 = vadd.xlane.f32.xlu1 %v986_v26  ;;  %987 = vadd.xlane.f32.xlu0 %v985_v25  ;;  %v962_v26 = vld [vmem:[#allocation10 + $0x10] sm:$0xff] }
 0x206   : > { %v4904_v30 = vpack.c.bf16 %v963_v27, %v962_v26  ;;  %v1659_v27 = vlaneseq }
 0x28a   : > { %v1139_v46 = vpop.xlane.xlu1 %1138 }
 0x28b   : > { %v1144_v47 = vmul.f32 0.0078125, %v1139_v46 }
 0x28d   : > { %v1147_v48 = vadd.f32 1e-05, %v1144_v47 }
 0x28e   : > { %v1141_v49 = vpop.xlane.xlu0 %1140  ;;  %v1143_v50 = vpop.xlane.xlu1 %1142 }
 0x28f   : > { %3829 = vrsqrt.f32 %v1147_v48  ;;  %v1145_v51 = vmul.f32 0.0078125, %v1141_v49  ;;  %v1146_v52 = vmul.f32 0.0078125, %v1143_v50  ;;  %v4971_v48 = vld [vmem:[%s948_s22 + $0x8] sm:$0xff] }
 0x290   : > { %v4973_v49 = vld [vmem:[%s953_s11 + $0x8] sm:$0xff] }
 0x291   : > { %v1148_v53 = vadd.f32 1e-05, %v1145_v51  ;;  %v1149_v54 = vadd.f32 1e-05, %v1146_v52  ;;  %v4977_v50 = vld [vmem:[%s808_s27 + $0x8] sm:$0xff] }
 0x292   : > { %v988_v55 = vpop.xlane.xlu0 %987  ;;  %v990_v56 = vpop.xlane.xlu1 %989  ;;  %v4981_v52 = vld [vmem:[%s817_s3 + $0x8] sm:$0xff] }
 0x293   : > { %3831 = vrsqrt.f32 %v1148_v53  ;;  %v991_v57 = vmul.f32 0.0078125, %v988_v55  ;;  %v992_v58 = vmul.f32 0.0078125, %v990_v56  ;;  %v4985_v53 = vld [vmem:[%s808_s27] sm:$0xff]  ;;  %s4268_s27 = smov 32  }
 0x294   : > { %3833 = vrsqrt.f32 %v1149_v54  ;;  %v4989_v55 = vld [vmem:[%s817_s3] sm:$0xff]  ;;  %s5373_s3 = sld [smem:[#allocation53_spill]] }
 0x295   : > { %v993_v59 = vadd.f32 1e-05, %v991_v57  ;;  %v994_v60 = vadd.f32 1e-05, %v992_v58 }
 0x297   : > { %3835 = vrsqrt.f32 %v993_v59 }
 0x298   : > { %3837 = vrsqrt.f32 %v994_v60 }
 0x299   : > { %v3830_v61 = vpop.eup %3829 }
 0x29a   : > { %v1153_v62 = vmul.f32 %v3830_v61, %v4815_v11 }
 0x29c   : > { %v1162_v5 = vmul.f32 %v3262_v63, %v1153_v62 }
 0x29d   : > { %v3832_v0 = vpop.eup %3831 }
 0x29e   : > { %v3834_v1 = vpop.eup %3833  ;;  %v1154_v2 = vmul.f32 %v3832_v0, %v4821_v18  ;;  %v1171_v16 = vadd.f32 %v3263_v7, %v1162_v5  ;;  %v973_v0 = vld [vmem:[%s953_s11 + $0x10] sm:$0xff] }
 0x29f   : > { %v1155_v8 = vmul.f32 %v3834_v1, %v4817_v12 }
 0x2a0   : > { %v1163_v9 = vmul.f32 %v3262_v63, %v1154_v2 }
 0x2a1   : > { %v3836_v10 = vpop.eup %3835  ;;  %v1164_v13 = vmul.f32 %v3262_v63, %v1155_v8  ;;  %v970_v63 = vld [vmem:[%s948_s22 + $0x10] sm:$0xff]  ;;  %s5371_s22 = sld [smem:[#allocation51_spill]] }
 0x2a2   : > { %v3838_v15 = vpop.eup %3837  ;;  %v1172_v17 = vadd.f32 %v3263_v7, %v1163_v9  ;;  %v997_v11 = vmul.f32 %v3836_v10, %v4824_v19 }
 0x2a3   : > { %v1173_v20 = vadd.f32 %v3263_v7, %v1164_v13  ;;  %v998_v18 = vmul.f32 %v3838_v15, %v4831_v24 }
 0x2a4   : > { %v1190_v22 = vpack.c.bf16 %v1172_v17, %v1171_v16  ;;  %v1005_v23 = vmul.f32 %v3252_v14, %v997_v11 }
 0x2a5   : > { %v1191_v25 = vpack.c.bf16 %v1173_v20, %v1173_v20  ;;  %v1006_v12 = vmul.f32 %v3252_v14, %v998_v18 }
 0x2a6   : > { %3530 = vmatprep.mubr.bf16.mxu1 %v1190_v22  ;;  %v1013_v28 = vadd.f32 %v3253_v21, %v1005_v23 }
 0x2a7   : > { %3531 = vmatmul.mubr.bf16.vlgmr.msra.gmra.mrb[0].mxu1 %v1191_v25  ;;  %v1014_v29 = vadd.f32 %v3253_v21, %v1006_v12 }
 0x2a8   : > { %3624 = vmatpush3.bf16.msra.mxu1 %v4892_v45  ;;  %3553 = vmatprep.mubr.msk.f32.mxu1 %vm4264_vm0, %v4263_v6 }
 0x2a9   : > { %v1031_v19 = vpack.c.bf16 %v1014_v29, %v1013_v28  ;;  %3625 = vmatprep.subr.bf16.mxu1 %v4265_v44  ;;  %v1599_v28 = vld [vmem:[%s825_s7] sm:$0x1]  ;;  %v5009_v29 = vshrl.u32 %v1659_v27, 7  ;;  %s938_s7 = scalar_lea.vmem [#allocation19], %s4757_s8  ;;  %s2977_s8 = scalar_lea.sflag [#allocation4], %s4754_s29 }
 0x2aa   : > { %vm1657_vm2 = vcmp.gt.f32.partialorder %v1599_v28, 0.5  ;;  %v3795_v28 = vld [vmem:[%s5368_s4] sm:$0xff]   ;;  %s2990_s24 = sshll.u32 %s938_s7, 4  ;;  %s5194_s24 = int_to_ptr.vmem [resolvable:$true] %s2990_s24 }
 0x2ab   : > { %3511 = vmatmul.mubr.bf16.vlgmr.msra.gmra.mrb[0].mxu0 %v1031_v19  ;;  %v1661_v19 = vsub.s32 0, %v5009_v29  ;;  %p4162_p2 = scmp.lt.s32.totalorder %s5194_s24, %s4160_s1 }
 0x2ac   : > { %3617 = vmatpush3.bf16.msra.mxu0 %v4892_v45  ;;  %3627 = vmatpush3.bf16.msra.mxu1 %v4904_v30 }
 0x2ad   : > { %3619 = vmatprep.subr.bf16.mxu0 %v4904_v30  ;;  %3579 = vmatprep.subr.bf16.mxu1 %v4263_v6 }
 0x2b0   : > { %3621 = vmatpush3.bf16.msra.mxu0 %v4904_v30 }
 0x2b1   : > { %3628 = vmatprep.subr.bf16.mxu0 %v4265_v44 }
 0x37a   : > { %v4915_v24 = vpop.f32.mrb[0].mxu1 }
 0x37b   : > { %v4917_v31 = vpop.f32.mrb[1].mxu1  ;;  %v1467_v13 = vmul.f32 %v4915_v24, %v970_v63 }
 0x37c   : > { %1474 = vrot.lane.b32.xlu0 %v4917_v31, %s4266_s5  ;;  %v3533_v32 = vpop.f32.mrb[2].mxu1  ;;  %3554 = vmatmul.mubr.msk.f32.vlgmr.msra.gmra.mrb[4].mxu1 %vm1288_vm1, %v4917_v31 }
 0x37d   : > { %v4923_v33 = vpop.f32.mrb[3].mxu1  ;;  %3556 = vmatprep.mubr.msk.f32.mxu1 %vm4264_vm0, %v4263_v6  ;;  %v4267_v32 = vmov 0  }
 0x37e   : > { %v1114_v34 = vpop.f32.mrb[0].mxu0  ;;  %1476 = vrot.lane.b32.xlu1 %v4923_v33, %s4266_s5  ;;  %v1466_v57 = vmul.f32 %v4923_v33, %v4971_v48 }
 0x37f   : > { %v3512_v35 = vpop.f32.mrb[1].mxu0  ;;  %3542 = vmatprep.mubr.msk.f32.mxu0 %vm1288_vm1, %v1114_v34  ;;  %v1370_v1 = vmul.f32 %v1114_v34, %v4985_v53 }
 0x380   : > { %v1117_v36 = vpop.f32.mrb[2].mxu0  ;;  %3557 = vmatmul.mubr.msk.f32.gmra.mrb[6].mxu1 %vm1288_vm1, %v4923_v33 }
 0x381   : > { %v3513_v37 = vpop.f32.mrb[3].mxu0  ;;  %3543 = vmatmul.mubr.msk.f32.vlgmr.msra.gmra.mrb[4].mxu0 %vm1288_vm1, %v1117_v36  ;;  %3559 = vmatprep.mubr.msk.f32.mxu1 %vm4264_vm0, %v4263_v6  ;;  %v1371_v60 = vmul.f32 %v1117_v36, %v4977_v50 }
 0x382   : > { %1478 = vrot.lane.b32.xlu1 %v4915_v24, %s4266_s5  ;;  %3630 = vmatpush3.bf16.msra.mxu0 %v4892_v45 }
 0x383   : > { %3631 = vmatprep.subr.bf16.mxu0 %v4265_v44  ;;  %3570 = vmatprep.mubr.msk.f32.mxu0 %vm4264_vm0, %v4263_v6  ;;  %v1465_v44 = vmul.f32 %v4917_v31, %v4964_v41 }
 0x384   : > { %3560 = vmatmul.mubr.msk.f32.gmra.mrb[8].mxu1 %vm1288_vm1, %v4915_v24 }
 0x385   : > { %3583 = vmatprep.mubr.msk.bf16.mxu1 %vm4264_vm0, %v4263_v6 }
 0x386   : > { %3633 = vmatpush3.bf16.msra.mxu0 %v4904_v30 }
 0x387   : > { %3587 = vmatprep.subr.bf16.mxu0 %v4263_v6 }
 0x3ee   : > { %v1475_v38 = vpop.permute.xlu0 %1474 }
 0x3ef   : > { %3571 = vmatmul.mubr.msk.f32.vlgmr.msra.gmra.mrb[6].mxu0 %vm1288_vm1, %v1475_v38 }
 0x3f0   : > { %v1477_v39 = vpop.permute.xlu1 %1476  ;;  %3573 = vmatprep.mubr.msk.f32.mxu0 %vm4264_vm0, %v4263_v6 }
 0x3f3   : > { %3574 = vmatmul.mubr.msk.f32.gmra.mrb[8].mxu0 %vm1288_vm1, %v1477_v39 }
 0x3f4   : > { %3576 = vmatprep.mubr.msk.f32.mxu0 %vm4264_vm0, %v4263_v6  ;;  %v1479_v40 = vpop.permute.xlu1 %1478 }
 0x3f7   : > { %3577 = vmatmul.mubr.msk.f32.gmra.mrb[10].mxu0 %vm1288_vm1, %v1479_v40 }
 0x3f8   : > { %3591 = vmatprep.mubr.msk.bf16.mxu0 %vm4264_vm0, %v4263_v6 }
 0x44f   : > { %v1451_v43 = vpop.f32.mrb[4].mxu1 }
 0x450   : > { %v1468_v46 = vmul.f32 %v1451_v43, %v4966_v42  ;;  %v3555_v47 = vpop.f32.mrb[5].mxu1 }
 0x452   : > { %v1471_v51 = vadd.f32 %v1468_v46, %v1465_v44 }
 0x453   : > { %v1456_v54 = vpop.f32.mrb[6].mxu1 }
 0x454   : > { %v3544_v56 = vpop.f32.mrb[4].mxu0  ;;  %v1469_v58 = vmul.f32 %v1456_v54, %v4973_v49  ;;  %v3558_v59 = vpop.f32.mrb[7].mxu1 }
 0x455   : > { %v1373_v61 = vmul.f32 %v3544_v56, %v4981_v52  ;;  %v1361_v62 = vpop.f32.mrb[5].mxu0 }
 0x456   : > { %v1472_v2 = vadd.f32 %v1469_v58, %v1466_v57  ;;  %v1372_v5 = vmul.f32 %v1361_v62, %v4989_v55 }
 0x457   : > { %v1375_v7 = vadd.f32 %v1373_v61, %v1371_v60  ;;  %v1461_v8 = vpop.f32.mrb[8].mxu1 }
 0x458   : > { %v1601_v9 = vpack.c.bf16 %v1472_v2, %v1471_v51  ;;  %v1374_v10 = vadd.f32 %v1372_v5, %v1370_v1  ;;  %v1470_v14 = vmul.f32 %v1461_v8, %v973_v0  ;;  %v3561_v15 = vpop.f32.mrb[9].mxu1 }
 0x45a   : > { %v1600_v16 = vpack.c.bf16 %v1375_v7, %v1374_v10  ;;  %v1473_v17 = vadd.f32 %v1470_v14, %v1467_v13  ;;  %v1609_v11 = vsel %vm1288_vm1, %v1601_v9, 0 }
 0x45b   : > { %3580 = vmatpush3.bf16.xpose.msra.mxu1 %v1609_v11 }
 0x45c   : > { %3581 = vmatprep.subr.bf16.mxu1 %v4263_v6  ;;  %v1602_v20 = vpack.c.bf16 %v1473_v17, %v1473_v17 }
 0x45e   : > { %v1612_v21 = vsel %vm1288_vm1, %v1602_v20, 0 }
 0x463   : > { %3582 = vmatpush3.bf16.xpose.msra.mxu1 %v1612_v21 }
 0x464   : > { %3635 = vmatprep.subr.bf16.mxu1 %v4892_v45 }
 0x46a   : > { %3584 = vmatmul.mubr.msk.bf16.vlgmr.msra.gmra.mrb[12].mxu1 %vm1288_vm1, %v1600_v16 }
 0x46b   : > { %3637 = vmatpush3.bf16.msra.mxu1 %v4892_v45  ;;  %v1658_v45 = vsel %vm1657_vm2, 1, %v4267_v32 }
 0x46c   : > { %3639 = vmatprep.subr.bf16.mxu1 %v4904_v30 }
 0x46f   : > { %3641 = vmatpush3.bf16.msra.mxu1 %v4904_v30  ;;  %v1662_v30 = vrot.slane %v1658_v45, %v1661_v19  ;;  %v3796_v45 = vld [vmem:[%s5368_s4 + $0x8] sm:$0xff]  }
 0x471   : > { %vm1663_vm3 = vcmp.eq.s32.totalorder %v1662_v30, 1 }
 0x4c2   : > { %v1552_v18 = vpop.f32.mrb[6].mxu0 }
 0x4c3   : > { %v3572_v22 = vpop.f32.mrb[7].mxu0  ;;  %v1581_v47 = vmul.f32 %v1552_v18, %v4966_v42 }
 0x4c6   : > { %v1557_v23 = vpop.f32.mrb[8].mxu0 }
 0x4c7   : > { %v3575_v25 = vpop.f32.mrb[9].mxu0  ;;  %v1582_v51 = vmul.f32 %v1557_v23, %v4973_v49 }
 0x4ca   : > { %v1562_v12 = vpop.f32.mrb[10].mxu0 }
 0x4cb   : > { %v3578_v26 = vpop.f32.mrb[11].mxu0  ;;  %v1583_v54 = vmul.f32 %v1562_v12, %v973_v0 }
 0x53d   : > { %v1648_v34 = vpop.f32.mrb[12].mxu1 }
 0x53e   : > { %v1655_v35 = vmul.f32 0.17677669, %v1648_v34  ;;  %v3585_v36 = vpop.f32.mrb[13].mxu1 }
 0x53f   : > { %v1651_v37 = vpop.f32.mrb[14].mxu1 }
 0x540   : > { %v1656_v38 = vmul.f32 0.17677669, %v1651_v37  ;;  %v3586_v39 = vpop.f32.mrb[15].mxu1  ;;  %v1664_v40 = vsel %vm1663_vm3, %v1655_v35, -1e+30 }
 0x541   : > { %v1667_v43 = vsel %vm1666_vm4, %v1664_v40, -inf }
 0x542   : > { %1668 = vmax.xlane.f32.xlu1 %v1667_v43  ;;  %v1665_v44 = vsel %vm1663_vm3, %v1656_v38, -1e+30 }
 0x543   : > { %v1670_v46 = vsel %vm1666_vm4, %v1665_v44, -inf }
 0x544   : > { %1671 = vmax.xlane.f32.xlu0 %v1670_v46 }
 0x553   : > { %1571 = vrot.lane.b32.xlu1 %v4971_v48, %s4268_s27 }
 0x557   : > { %1587 = vrot.lane.b32.xlu1 %v1581_v47, %s4268_s27 }
 0x55a   : > { %1569 = vrot.lane.b32.xlu0 %v4964_v41, %s4268_s27 }
 0x55b   : > { %1573 = vrot.lane.b32.xlu1 %v970_v63, %s4268_s27 }
 0x55e   : > { %1589 = vrot.lane.b32.xlu0 %v1582_v51, %s4268_s27 }
 0x562   : > { %1591 = vrot.lane.b32.xlu0 %v1583_v54, %s4268_s27  ;;  %v1906_v54 = vld [vmem:[#allocation16] sm:$0xff] }
 0x5cf   : > { %v1669_v56 = vpop.xlane.xlu1 %1668 }
 0x5d0   : > { %v1673_v57 = vsub.f32 %v1664_v40, %v1669_v56  ;;  %v1910_v56 = vld [vmem:[#allocation16 + $0x20] sm:$0xff] }
 0x5d1   : > { %v1672_v58 = vpop.xlane.xlu0 %1671 }
 0x5d2   : > { %v1675_v59 = vmul.f32 1.442695, %v1673_v57  ;;  %v1674_v60 = vsub.f32 %v1665_v44, %v1672_v58  ;;  %v3287_v44 = vld [vmem:[%s5369_s16] ss:$0 sm:$0xff]  ;;  %v1907_v57 = vld [vmem:[#allocation16 + $0x8] sm:$0xff]  ;;  %v3290_v58 = vcombine.low %v1906_v54, %v1910_v56 }
 0x5d3   : > { %v1572_v61 = vpop.permute.xlu1 %1571 }
 0x5d4   : > { %3839 = vpow2.f32 %v1675_v59  ;;  %v1677_v62 = vmul.f32 1.442695, %v1674_v60  ;;  %v1579_v41 = vmul.f32 %v1572_v61, %v4923_v33  ;;  %v3291_v59 = vcombine.high %v1906_v54, %v1910_v56  ;;  %v1911_v60 = vld [vmem:[#allocation16 + $0x28] sm:$0xff]  ;;  %v1918_v61 = vld [vmem:[#allocation16 + $0x60] sm:$0xff] }
 0x5d5   : > { %v1570_v48 = vpop.permute.xlu0 %1569  ;;  %v1959_v56 = vld [vmem:[#allocation16 + $0x1a8] sm:$0xff] }
 0x5d6   : > { %3841 = vpow2.f32 %v1677_v62  ;;  %v1578_v42 = vmul.f32 %v1570_v48, %v4917_v31  ;;  %v3292_v62 = vcombine.low %v1907_v57, %v1911_v60  ;;  %v3293_v48 = vcombine.high %v1907_v57, %v1911_v60  ;;  %2436 = vmatprep.subr.bf16.mxu1 %v3291_v59  ;;  %v1962_v60 = vld [vmem:[#allocation16 + $0x1c0] sm:$0xff] }
 0x5d7   : > { %v1588_v1 = vpop.permute.xlu1 %1587 }
 0x5d8   : > { %v1596_v49 = vadd.f32 %v1588_v1, %v1578_v42  ;;  %v1915_v1 = vld [vmem:[#allocation16 + $0x48] sm:$0xff] }
 0x5d9   : > { %v1590_v63 = vpop.permute.xlu0 %1589 }
 0x5da   : > { %v1597_v2 = vadd.f32 %v1590_v63, %v1579_v41 }
 0x5db   : > { %v1574_v10 = vpop.permute.xlu1 %1573 }
 0x5dc   : > { %v1603_v0 = vpack.c.bf16 %v1597_v2, %v1596_v49  ;;  %v1580_v13 = vmul.f32 %v4915_v24, %v1574_v10 }
 0x5dd   : > { %v1592_v14 = vpop.permute.xlu0 %1591 }
 0x5de   : > { %v3840_v5 = vpop.eup %3839  ;;  %v1598_v31 = vadd.f32 %v1592_v14, %v1580_v13  ;;  %v1922_v14 = vld [vmem:[#allocation16 + $0x80] sm:$0xff] }
 0x5df   : > { %v1679_v7 = vsel %vm1666_vm4, %v3840_v5, 0.0 }
 0x5e0   : > { %v3842_v8 = vpop.eup %3841  ;;  %1680 = vadd.xlane.f32.xlu1 %v1679_v7  ;;  %v1604_v15 = vpack.c.bf16 %v1598_v31, %v1598_v31  ;;  %v1926_v31 = vld [vmem:[#allocation16 + $0xa0] sm:$0xff] }
 0x5e1   : > { %v1682_v9 = vsel %vm1666_vm4, %v3842_v8, 0.0 }
 0x5e2   : > { %1683 = vadd.xlane.f32.xlu0 %v1682_v9 }
 0x5f1   : > { %1694 = vrot.lane.b32.xlu1 %v1604_v15, %s4266_s5  ;;  %v1923_v15 = vld [vmem:[#allocation16 + $0x88] sm:$0xff] }
 0x5f8   : > { %1692 = vrot.lane.b32.xlu0 %v1603_v0, %s4266_s5  ;;  %s5199_s5 = scalar_lea.hbm %s5375_s19, %s3395_s6 }
 0x66d   : > { %v1681_v33 = vpop.xlane.xlu1 %1680 }
 0x66e   : > { %3843 = vrcp.f32 %v1681_v33  ;;  %v3307_v33 = vcombine.high %v1922_v14, %v1926_v31 }
 0x66f   : > { %v1684_v16 = vpop.xlane.xlu0 %1683 }
 0x670   : > { %3845 = vrcp.f32 %v1684_v16  ;;  %v1927_v16 = vld [vmem:[#allocation16 + $0xa8] sm:$0xff] }
 0x671   : > { %v1695_v11 = vpop.permute.xlu1 %1694 }
 0x672   : > { %v1702_v20 = vsel %vm1700_vm5, %v1695_v11, 0  ;;  %v3308_v11 = vcombine.low %v1923_v15, %v1927_v16 }
 0x673   : > { %v1693_v17 = vpop.permute.xlu0 %1692 }
 0x674   : > { %3588 = vmatpush3.bf16.msra.mxu0 %v1693_v17  ;;  %v3306_v17 = vcombine.low %v1922_v14, %v1926_v31 }
 0x675   : > { %3589 = vmatprep.subr.bf16.mxu0 %v4263_v6 }
 0x678   : > { %v3844_v21 = vpop.eup %3843  ;;  %3590 = vmatpush3.bf16.msra.mxu0 %v1702_v20  ;;  %v3309_v20 = vcombine.high %v1923_v15, %v1927_v16 }
 0x679   : > { %3606 = vmatprep.subr.bf16.mxu0 %v4263_v6  ;;  %v1687_v18 = vmul.f32 %v3844_v21, %v3840_v5  ;;  %v1930_v21 = vld [vmem:[#allocation16 + $0xc0] sm:$0xff] }
 0x67a   : > { %v3846_v24 = vpop.eup %3845 }
 0x67b   : > { %v1688_v22 = vmul.f32 %v3846_v24, %v3842_v8  ;;  %v1934_v24 = vld [vmem:[#allocation16 + $0xe0] sm:$0xff] }
 0x67d   : > { %v1689_v23 = vpack.c.bf16 %v1688_v22, %v1687_v18  ;;  %v1931_v18 = vld [vmem:[#allocation16 + $0xc8] sm:$0xff]  ;;  %v3315_v22 = vcombine.high %v1930_v21, %v1934_v24 }
 0x67f   : > { %3592 = vmatmul.mubr.msk.bf16.vlgmr.msra.gmra.mrb[12].mxu0 %vm1666_vm4, %v1689_v23  ;;  %v1935_v23 = vld [vmem:[#allocation16 + $0xe8] sm:$0xff] }
 0x680   : > { %3610 = vmatprep.mubr.msk.bf16.mxu0 %vm4264_vm0, %v4263_v6  ;;  %3607 = vmatpush3.bf16.msra.mxu0 %v3795_v28  ;;  %v1942_v28 = vld [vmem:[#allocation16 + $0x120] sm:$0xff] }
 0x681   : > { %3608 = vmatprep.subr.bf16.mxu0 %v4263_v6 }
 0x684   : > { %3609 = vmatpush3.bf16.msra.mxu0 %v3796_v45  ;;  %v1939_v45 = vld [vmem:[#allocation16 + $0x108] sm:$0xff] }
 0x685   : > { %2479 = vmatprep.subr.bf16.mxu0 %v3293_v48 }
 0x752   : > { %v1738_v25 = vpop.f32.mrb[12].mxu0 }
 0x753   : > { %v3593_v12 = vpop.f32.mrb[13].mxu0  ;;  %3603 = vmatprep.mubr.msk.f32.mxu1 %vm1288_vm1, %v1738_v25  ;;  %v1826_v37 = vmul.f32 %v1738_v25, %v4985_v53  ;;  %v3314_v25 = vcombine.low %v1930_v21, %v1934_v24 }
 0x754   : > { %v1741_v26 = vpop.f32.mrb[14].mxu0  ;;  %v3316_v12 = vcombine.low %v1931_v18, %v1935_v23 }
 0x755   : > { %v3594_v27 = vpop.f32.mrb[15].mxu0  ;;  %3604 = vmatmul.mubr.msk.f32.vlgmr.msra.gmra.mrb[10].mxu1 %vm1288_vm1, %v1741_v26  ;;  %v1827_v34 = vmul.f32 %v1741_v26, %v4977_v50  ;;  %v3317_v26 = vcombine.high %v1931_v18, %v1935_v23 }
 0x756   : > { %2468 = vmatprep.mubr.bf16.mxu1 %v4267_v32  ;;  %2437 = vmatpush1.bf16.msra.mxu1 %v3290_v58  ;;  %v1938_v27 = vld [vmem:[#allocation16 + $0x100] sm:$0xff] }
 0x828   : > { %v3605_v30 = vpop.f32.mrb[10].mxu1 }
 0x829   : > { %v1829_v35 = vmul.f32 %v3605_v30, %v4981_v52  ;;  %v1817_v36 = vpop.f32.mrb[11].mxu1  ;;  %v3323_v30 = vcombine.high %v1938_v27, %v1942_v28 }
 0x82a   : > { %v1828_v38 = vmul.f32 %v1817_v36, %v4989_v55 }
 0x82b   : > { %v1831_v39 = vsub.f32 %v1827_v34, %v1829_v35  ;;  %v1943_v34 = vld [vmem:[#allocation16 + $0x128] sm:$0xff]  ;;  %v3322_v35 = vcombine.low %v1938_v27, %v1942_v28  ;;  %v1921_v27 = vld [vmem:[#allocation16 + $0x78] sm:$0xff] }
 0x82c   : > { %v1830_v40 = vsub.f32 %v1826_v37, %v1828_v38  ;;  %v3324_v36 = vcombine.low %v1939_v45, %v1943_v34  ;;  %v3325_v37 = vcombine.high %v1939_v45, %v1943_v34  ;;  %v1946_v38 = vld [vmem:[#allocation16 + $0x140] sm:$0xff] }
 0x82e   : > { %v1836_v43 = vpack.c.bf16 %v1831_v39, %v1830_v40  ;;  %v1950_v39 = vld [vmem:[#allocation16 + $0x160] sm:$0xff]  ;;  %v1947_v40 = vld [vmem:[#allocation16 + $0x148] sm:$0xff] }
 0x830   : > { %3611 = vmatmul.mubr.msk.bf16.vlgmr.msra.gmra.mrb[16].mxu0 %vm1288_vm1, %v1836_v43  ;;  %v3331_v43 = vcombine.high %v1946_v38, %v1950_v39 }
 0x831   : > { %2511 = vmatprep.mubr.bf16.mxu0 %v4267_v32  ;;  %2480 = vmatpush1.bf16.msra.mxu0 %v3292_v62 }
 0x903   : > { %v1886_v6 = vpop.f32.mrb[16].mxu0 }
 0x904   : > { %v1893_v50 = vadd.f32 %v1886_v6, %v4803_v3  ;;  %v3612_v52 = vpop.f32.mrb[17].mxu0  ;;  %v1914_v3 = vld [vmem:[#allocation16 + $0x40] sm:$0xff]  ;;  %v1951_v6 = vld [vmem:[#allocation16 + $0x168] sm:$0xff] }
 0x905   : > { %v1889_v46 = vpop.f32.mrb[18].mxu0  ;;  %v3299_v42 = vcombine.high %v1914_v3, %v1918_v61  ;;  %v3298_v63 = vcombine.low %v1914_v3, %v1918_v61  ;;  %v3333_v52 = vcombine.high %v1947_v40, %v1951_v6  ;;  %v1966_v3 = vld [vmem:[#allocation16 + $0x1e0] sm:$0xff]  ;;  %v1963_v61 = vld [vmem:[#allocation16 + $0x1c8] sm:$0xff] }
 0x906   : > { %v5053_v47 = vadd.f32 %v3287_v44, %v1893_v50  ;;  %v1894_v53 = vadd.f32 %v1889_v46, %v4807_v4  ;;  %v3613_v55 = vpop.f32.mrb[19].mxu0  ;;  %v1919_v4 = vld [vmem:[#allocation16 + $0x68] sm:$0xff]  ;;  %v3332_v50 = vcombine.low %v1947_v40, %v1951_v6  ;;  %v1954_v46 = vld [vmem:[#allocation16 + $0x180] sm:$0xff]  ;;  %v3346_v62 = vcombine.low %v1962_v60, %v1966_v3  ;;  %v1932_v6 = vld [vmem:[#allocation16 + $0xd0] sm:$0xff] }
 0x907   : > { %v3301_v41 = vcombine.high %v1915_v1, %v1919_v4  ;;  %2438 = vmatprep.subr.bf16.mxu1 %v3299_v42  ;;  %v3300_v49 = vcombine.low %v1915_v1, %v1919_v4  ;;  %v1955_v55 = vld [vmem:[#allocation16 + $0x188] sm:$0xff]  ;;  %v3347_v48 = vcombine.high %v1962_v60, %v1966_v3  ;;  %v1908_v1 = vld [vmem:[#allocation16 + $0x10] sm:$0xff] }
 0x908   : > { %v5056_v51 = vadd.f32 %v3287_v44, %v1894_v53  ;;  %2036 = vadd.xlane.f32.xlu1 %v5053_v47  ;;  %2439 = vmatpush1.bf16.msra.mxu1 %v3298_v63  ;;  %v3330_v44 = vcombine.low %v1946_v38, %v1950_v39  ;;  %v1958_v53 = vld [vmem:[#allocation16 + $0x1a0] sm:$0xff]  ;;  %v3340_v58 = vcombine.low %v1955_v55, %v1959_v56  ;;  %v1967_v42 = vld [vmem:[#allocation16 + $0x1e8] sm:$0xff]  ;;  %v1912_v4 = vld [vmem:[#allocation16 + $0x30] sm:$0xff] }
 0x909   : > { %2481 = vmatprep.subr.bf16.mxu0 %v3301_v41  ;;  %2440 = vmatprep.subr.bf16.mxu1 %v3307_v33  ;;  %v3339_v54 = vcombine.high %v1954_v46, %v1958_v53  ;;  %v3338_v57 = vcombine.low %v1954_v46, %v1958_v53  ;;  %v3341_v59 = vcombine.high %v1955_v55, %v1959_v56  ;;  %v1940_v56 = vld [vmem:[#allocation16 + $0x110] sm:$0xff] }
 0x90a   : > { %2038 = vadd.xlane.f32.xlu0 %v5056_v51  ;;  %2482 = vmatpush1.bf16.msra.mxu0 %v3300_v49  ;;  %v3348_v41 = vcombine.low %v1963_v61, %v1967_v42  ;;  %v3349_v63 = vcombine.high %v1963_v61, %v1967_v42  ;;  %v3294_v49 = vcombine.low %v1908_v1, %v1912_v4  ;;  %v1949_v42 = vld [vmem:[#allocation16 + $0x158] sm:$0xff] }
 0x90b   : > { %2483 = vmatprep.subr.bf16.mxu0 %v3309_v20  ;;  %v3288_v20 = vld [vmem:[%s5370_s21] ss:$0 sm:$0xff]  ;;  %s4155_s21 = scalar_lea.vmem %s5194_s24, 256 }
 0x90c   : > { %2441 = vmatpush1.bf16.msra.mxu1 %v3306_v17  ;;  %p4156_p13 = scmp.ne.s32.totalorder %s5194_s24, %s4155_s21  ;;  %p4163_p8 = scmp.lt.s32.totalorder %s4161_s15, %s4155_s21 }
 0x90d   : > { %2442 = vmatprep.subr.bf16.mxu1 %v3315_v22  ;;  %v3289_v22 = vld [vmem:[%s5371_s22] ss:$0 sm:$0xff] }
 0x90e   : > { %2484 = vmatpush1.bf16.msra.mxu0 %v3308_v11  ;;  %p4157_p11 = pnand %p4156_p13, %p5376_p9  ;;  %p4164_p3 = por %p4163_p8, %p4162_p2 }
 0x90f   : > { %2485 = vmatprep.subr.bf16.mxu0 %v3317_v26  ;;  %v1917_v26 = vld [vmem:[#allocation16 + $0x58] sm:$0xff] }
 0x910   : > { %2443 = vmatpush1.bf16.msra.mxu1 %v3314_v25  ;;  %v1916_v25 = vld [vmem:[#allocation16 + $0x50] sm:$0xff]  ;;  %v3305_v34 = vcombine.high %v1917_v26, %v1921_v27  ;;  %v3304_v39 = vcombine.low %v1917_v26, %v1921_v27  ;;  %v3800_v26 = vld [vmem:[#allocation17 + $0x80] sm:$0xff]   ;;  %v3801_v27 = vld [vmem:[#allocation17 + $0x48] sm:$0xff]   ;;  %p4158_p5 = pneg %p4157_p11 }
 0x911   : > { %2444 = vmatprep.subr.bf16.mxu1 %v3323_v30 }
 0x912   : > { %2486 = vmatpush1.bf16.msra.mxu0 %v3316_v12  ;;  %v1920_v12 = vld [vmem:[#allocation16 + $0x70] sm:$0xff]  ;;  %p4165_p6 = pnand %p4164_p3, %p4158_p5 }
 0x913   : > { %2487 = vmatprep.subr.bf16.mxu0 %v3325_v37  ;;  %v3303_v30 = vcombine.high %v1916_v25, %v1920_v12  ;;  %v1925_v37 = vld [vmem:[#allocation16 + $0x98] sm:$0xff]  ;;  %v3302_v38 = vcombine.low %v1916_v25, %v1920_v12  ;;  %v3798_v25 = vld [vmem:[#allocation17 + $0xc0] sm:$0xff]  }
 0x914   : > { %2445 = vmatpush1.bf16.msra.mxu1 %v3322_v35  ;;  %v1924_v35 = vld [vmem:[#allocation16 + $0x90] sm:$0xff]  ;;  %v3799_v12 = vld [vmem:[#allocation17] sm:$0xff]  }
 0x915   : > { %2446 = vmatprep.subr.bf16.mxu1 %v3331_v43 }
 0x916   : > { %2488 = vmatpush1.bf16.msra.mxu0 %v3324_v36  ;;  %v1928_v36 = vld [vmem:[#allocation16 + $0xb0] sm:$0xff] }
 0x917   : > { %2489 = vmatprep.subr.bf16.mxu0 %v3333_v52  ;;  %v3311_v40 = vcombine.high %v1924_v35, %v1928_v36  ;;  %v1937_v52 = vld [vmem:[#allocation16 + $0xf8] sm:$0xff]  ;;  %v3310_v46 = vcombine.low %v1924_v35, %v1928_v36  ;;  %v3806_v35 = vld [vmem:[#allocation17 + $0xd0] sm:$0xff]  }
 0x918   : > { %2447 = vmatpush1.bf16.msra.mxu1 %v3330_v44  ;;  %v1936_v44 = vld [vmem:[#allocation16 + $0xf0] sm:$0xff] }
 0x919   : > { %2448 = vmatprep.subr.bf16.mxu1 %v3339_v54  ;;  %v3319_v55 = vcombine.high %v1932_v6, %v1936_v44  ;;  %v3318_v60 = vcombine.low %v1932_v6, %v1936_v44  ;;  %v3807_v36 = vld [vmem:[#allocation17 + $0x10] sm:$0xff]   ;;  %v3815_v6 = vld [vmem:[#allocation17 + $0x20] sm:$0xff]  }
 0x91a   : > { %2490 = vmatpush1.bf16.msra.mxu0 %v3332_v50  ;;  %v1933_v50 = vld [vmem:[#allocation16 + $0xd8] sm:$0xff]  ;;  %v3816_v44 = vld [vmem:[#allocation17 + $0xa0] sm:$0xff]  }
 0x91b   : > { %2491 = vmatprep.subr.bf16.mxu0 %v3341_v59  ;;  %v3321_v54 = vcombine.high %v1933_v50, %v1937_v52  ;;  %v1945_v59 = vld [vmem:[#allocation16 + $0x138] sm:$0xff]  ;;  %v3320_v3 = vcombine.low %v1933_v50, %v1937_v52  ;;  %v3817_v50 = vld [vmem:[#allocation17 + $0x68] sm:$0xff]  }
 0x91c   : > { %2449 = vmatpush1.bf16.msra.mxu1 %v3338_v57  ;;  %v1944_v57 = vld [vmem:[#allocation16 + $0x130] sm:$0xff]  ;;  %v3818_v52 = vld [vmem:[#allocation17 + $0xe8] sm:$0xff]  }
 0x91d   : > { %2450 = vmatprep.subr.bf16.mxu1 %v3347_v48  ;;  %v3327_v61 = vcombine.high %v1940_v56, %v1944_v57  ;;  %v1952_v48 = vld [vmem:[#allocation16 + $0x170] sm:$0xff] }
 0x91e   : > { %2492 = vmatpush1.bf16.msra.mxu0 %v3340_v58  ;;  %v1941_v58 = vld [vmem:[#allocation16 + $0x118] sm:$0xff] }
 0x91f   : > { %2493 = vmatprep.subr.bf16.mxu0 %v3349_v63 }
 0x920   : > { %2451 = vmatpush1.bf16.msra.mxu1 %v3346_v62  ;;  %v1948_v62 = vld [vmem:[#allocation16 + $0x150] sm:$0xff] }
 0x921   : > { %v3335_v63 = vcombine.high %v1948_v62, %v1952_v48 }
 0x922   : > { %2494 = vmatpush1.bf16.msra.mxu0 %v3348_v41  ;;  %v3328_v41 = vcombine.low %v1941_v58, %v1945_v59 }
 0x995   : > { %v2037_v2 = vpop.xlane.xlu1 %2036 }
 0x996   : > { %v2040_v0 = vmul.f32 0.0078125, %v2037_v2  ;;  %v3295_v2 = vcombine.high %v1908_v1, %v1912_v4  ;;  %v1953_v1 = vld [vmem:[#allocation16 + $0x178] sm:$0xff]  ;;  %v3326_v4 = vcombine.low %v1940_v56, %v1944_v57  ;;  %v3823_v56 = vld [vmem:[#allocation17 + $0x30] sm:$0xff]  }
 0x997   : > { %v2039_v5 = vpop.xlane.xlu0 %2038  ;;  %v3824_v57 = vld [vmem:[#allocation17 + $0xb0] sm:$0xff]  }
 0x998   : > { %v5061_v7 = vsub.f32 %v5053_v47, %v2040_v0  ;;  %v2041_v8 = vmul.f32 0.0078125, %v2039_v5  ;;  %v1909_v0 = vld [vmem:[#allocation16 + $0x18] sm:$0xff]  ;;  %2522 = vmatprep.subr.bf16.mxu1 %v3295_v2  ;;  %v1956_v2 = vld [vmem:[#allocation16 + $0x190] sm:$0xff] }
 0x999   : > { %v1913_v5 = vld [vmem:[#allocation16 + $0x38] sm:$0xff] }
 0x99a   : > { %v5064_v9 = vsub.f32 %v5056_v51, %v2041_v8  ;;  %v2044_v10 = vmul.f32 %v5061_v7, %v5061_v7  ;;  %v3296_v8 = vcombine.low %v1909_v0, %v1913_v5 }
 0x99c   : > { %2046 = vadd.xlane.f32.xlu0 %v2044_v10  ;;  %v2045_v13 = vmul.f32 %v5064_v9, %v5064_v9  ;;  %v3297_v10 = vcombine.high %v1909_v0, %v1913_v5  ;;  %v1960_v0 = vld [vmem:[#allocation16 + $0x1b0] sm:$0xff]  ;;  %v1957_v5 = vld [vmem:[#allocation16 + $0x198] sm:$0xff] }
 0x99e   : > { %2565 = vmatprep.subr.bf16.mxu0 %v3297_v10  ;;  %v3334_v10 = vcombine.low %v1948_v62, %v1952_v48 }
 0x9a0   : > { %2048 = vadd.xlane.f32.xlu0 %v2045_v13 }
 0xa29   : > { %v2047_v13 = vpop.xlane.xlu0 %2046 }
 0xa2a   : > { %v2050_v14 = vmul.f32 0.0078125, %v2047_v13  ;;  %v3336_v13 = vcombine.low %v1949_v42, %v1953_v1 }
 0xa2c   : > { %v2052_v31 = vadd.f32 1e-05, %v2050_v14  ;;  %v3343_v14 = vcombine.high %v1956_v2, %v1960_v0 }
 0xa2d   : > { %v2049_v15 = vpop.xlane.xlu0 %2048 }
 0xa2e   : > { %3847 = vrsqrt.f32 %v2052_v31  ;;  %v2051_v33 = vmul.f32 0.0078125, %v2049_v15  ;;  %v1964_v15 = vld [vmem:[#allocation16 + $0x1d0] sm:$0xff] }
 0xa30   : > { %v2053_v16 = vadd.f32 1e-05, %v2051_v33  ;;  %v1968_v33 = vld [vmem:[#allocation16 + $0x1f0] sm:$0xff] }
 0xa32   : > { %3849 = vrsqrt.f32 %v2053_v16  ;;  %v1965_v16 = vld [vmem:[#allocation16 + $0x1d8] sm:$0xff] }
 0xa38   : > { %v3848_v17 = vpop.eup %3847 }
 0xa39   : > { %v2056_v11 = vmul.f32 %v3848_v17, %v5061_v7  ;;  %v1969_v17 = vld [vmem:[#allocation16 + $0x1f8] sm:$0xff] }
 0xa3b   : > { %v2064_v18 = vmul.f32 %v3288_v20, %v2056_v11  ;;  %v3342_v11 = vcombine.low %v1956_v2, %v1960_v0  ;;  %v2098_v2 = vsub.s32 5, %v5009_v29  ;;  %v2106_v0 = vsub.s32 7, %v5009_v29 }
 0xa3c   : > { %v3850_v21 = vpop.eup %3849 }
 0xa3d   : > { %v2057_v24 = vmul.f32 %v3850_v21, %v5064_v9  ;;  %v2072_v28 = vadd.f32 %v3289_v22, %v2064_v18  ;;  %v1929_v9 = vld [vmem:[#allocation16 + $0xb8] sm:$0xff]  ;;  %v3351_v21 = vcombine.high %v1964_v15, %v1968_v33  ;;  %v3350_v18 = vcombine.low %v1964_v15, %v1968_v33 }
 0xa3e   : > { %v3313_v43 = vcombine.high %v1925_v37, %v1929_v9  ;;  %v3312_v53 = vcombine.low %v1925_v37, %v1929_v9  ;;  %v3809_v37 = vld [vmem:[#allocation17 + $0x58] sm:$0xff]  }
 0xa3f   : > { %v2065_v23 = vmul.f32 %v3288_v20, %v2057_v24  ;;  %v3353_v24 = vcombine.high %v1965_v16, %v1969_v17  ;;  %v3810_v9 = vld [vmem:[#allocation17 + $0xd8] sm:$0xff]  }
 0xa41   : > { %v2073_v45 = vadd.f32 %v3289_v22, %v2065_v23  ;;  %v3352_v22 = vcombine.low %v1965_v16, %v1969_v17  ;;  %v3797_v23 = vld [vmem:[#allocation17 + $0x40] sm:$0xff]  }
 0xa43   : > { %v5078_v7 = vpack.c.bf16 %v2073_v45, %v2072_v28  ;;  %v3802_v28 = vld [vmem:[#allocation17 + $0xc8] sm:$0xff]  }
 0xa44   : > { %v3803_v45 = vld [vmem:[#allocation17 + $0x8] sm:$0xff]  }
 0xa45   : > { %2469 = vmatmul.mubr.bf16.vlgmr.msra.gmra.mrb[16].mxu1 %v5078_v7  ;;  %2512 = vmatmul.mubr.bf16.vlgmr.msra.gmra.mrb[20].mxu0 %v5078_v7 }
 0xa46   : > { %2523 = vmatpush1.bf16.msra.mxu1 %v3294_v49  ;;  %2566 = vmatpush1.bf16.msra.mxu0 %v3296_v8  ;;  %v3337_v49 = vcombine.high %v1949_v42, %v1953_v1  ;;  %v1961_v8 = vld [vmem:[#allocation16 + $0x1b8] sm:$0xff] }
 0xa47   : > { %2524 = vmatprep.subr.bf16.mxu1 %v3303_v30  ;;  %2567 = vmatprep.subr.bf16.mxu0 %v3305_v34  ;;  %v3345_v31 = vcombine.high %v1957_v5, %v1961_v8  ;;  %v3344_v20 = vcombine.low %v1957_v5, %v1961_v8  ;;  %v3804_v30 = vld [vmem:[#allocation17 + $0x88] sm:$0xff]   ;;  %v3805_v34 = vld [vmem:[#allocation17 + $0x50] sm:$0xff]   ;;  %v5109_v5 = vld [vmem:[%s5372_s14] sm:$0xff] }
 0xa48   : > { %2554 = vmatprep.mubr.bf16.mxu1 %v4267_v32  ;;  %2597 = vmatprep.mubr.bf16.mxu0 %v4267_v32  ;;  %v3329_v32 = vcombine.high %v1941_v58, %v1945_v59  ;;  %v3825_v58 = vld [vmem:[#allocation17 + $0x78] sm:$0xff]  }
 0xa49   : > { %v3826_v59 = vld [vmem:[#allocation17 + $0xf8] sm:$0xff]  }
 0xa4a   : > { %2525 = vmatpush1.bf16.msra.mxu1 %v3302_v38  ;;  %2568 = vmatpush1.bf16.msra.mxu0 %v3304_v39  ;;  %v3811_v38 = vld [vmem:[#allocation17 + $0x18] sm:$0xff]  }
 0xa4b   : > { %2526 = vmatprep.subr.bf16.mxu1 %v3311_v40  ;;  %2569 = vmatprep.subr.bf16.mxu0 %v3313_v43  ;;  %v3812_v39 = vld [vmem:[#allocation17 + $0x98] sm:$0xff]   ;;  %v3813_v40 = vld [vmem:[#allocation17 + $0x60] sm:$0xff]  }
 0xa4c   : > { %v3814_v43 = vld [vmem:[#allocation17 + $0xe0] sm:$0xff]  }
 0xa4e   : > { %2527 = vmatpush1.bf16.msra.mxu1 %v3310_v46  ;;  %2570 = vmatpush1.bf16.msra.mxu0 %v3312_v53  ;;  %v3819_v46 = vld [vmem:[#allocation17 + $0x28] sm:$0xff]  }
 0xa4f   : > { %2528 = vmatprep.subr.bf16.mxu1 %v3319_v55  ;;  %2571 = vmatprep.subr.bf16.mxu0 %v3321_v54  ;;  %v3820_v53 = vld [vmem:[#allocation17 + $0xa8] sm:$0xff]   ;;  %v3821_v55 = vld [vmem:[#allocation17 + $0x70] sm:$0xff]  }
 0xa50   : > { %v3822_v54 = vld [vmem:[#allocation17 + $0xf0] sm:$0xff]  }
 0xa52   : > { %2529 = vmatpush1.bf16.msra.mxu1 %v3318_v60  ;;  %2572 = vmatpush1.bf16.msra.mxu0 %v3320_v3  ;;  %v3827_v60 = vld [vmem:[#allocation17 + $0x38] sm:$0xff]  }
 0xa53   : > { %2530 = vmatprep.subr.bf16.mxu1 %v3327_v61  ;;  %2573 = vmatprep.subr.bf16.mxu0 %v3329_v32  ;;  %v3828_v3 = vld [vmem:[#allocation17 + $0xb8] sm:$0xff]  }
 0xa56   : > { %2531 = vmatpush1.bf16.msra.mxu1 %v3326_v4  ;;  %2574 = vmatpush1.bf16.msra.mxu0 %v3328_v41 }
 0xa57   : > { %2532 = vmatprep.subr.bf16.mxu1 %v3335_v63  ;;  %2575 = vmatprep.subr.bf16.mxu0 %v3337_v49  ;;  %v2094_v63 = vsub.s32 4, %v5009_v29  ;;  %v2102_v49 = vsub.s32 6, %v5009_v29 }
 0xa59   : > { %v2095_v8 = vrot.slane %v5109_v5, %v2094_v63 }
 0xa5a   : > { %2533 = vmatpush1.bf16.msra.mxu1 %v3334_v10  ;;  %2576 = vmatpush1.bf16.msra.mxu0 %v3336_v13  ;;  %v2103_v10 = vrot.slane %v5109_v5, %v2102_v49  ;;  %v2099_v13 = vrot.slane %v5109_v5, %v2098_v2 }
 0xa5b   : > { %2534 = vmatprep.subr.bf16.mxu1 %v3343_v14  ;;  %2577 = vmatprep.subr.bf16.mxu0 %v3345_v31  ;;  %v2107_v14 = vrot.slane %v5109_v5, %v2106_v0 }
 0xa5e   : > { %2535 = vmatpush1.bf16.msra.mxu1 %v3342_v11  ;;  %2578 = vmatpush1.bf16.msra.mxu0 %v3344_v20 }
 0xa5f   : > { %2536 = vmatprep.subr.bf16.mxu1 %v3351_v21  ;;  %2579 = vmatprep.subr.bf16.mxu0 %v3353_v24 }
 0xa62   : > { %2537 = vmatpush1.bf16.msra.mxu1 %v3350_v18  ;;  %2580 = vmatpush1.bf16.msra.mxu0 %v3352_v22 }
 0xa63   : > { %3450 = vmatprep.subr.bf16.mxu1 %v3797_v23  ;;  %3472 = vmatprep.subr.bf16.mxu0 %v3798_v25 }
 0xa65   : > { %2555 = vmatmul.mubr.bf16.vlgmr.msra.gmra.mrb[20].mxu1 %v5078_v7  ;;  %2598 = vmatmul.mubr.bf16.vlgmr.msra.gmra.mrb[24].mxu0 %v5078_v7  ;;  %v3808_v7 = vld [vmem:[#allocation17 + $0x90] sm:$0xff]  }
 0xa66   : > { %3451 = vmatpush3.bf16.msra.mxu1 %v3799_v12  ;;  %3473 = vmatpush3.bf16.msra.mxu0 %v3800_v26 }
 0xa67   : > { %3452 = vmatprep.subr.bf16.mxu1 %v3801_v27  ;;  %3474 = vmatprep.subr.bf16.mxu0 %v3802_v28 }
 0xa6a   : > { %3453 = vmatpush3.bf16.msra.mxu1 %v3803_v45  ;;  %3475 = vmatpush3.bf16.msra.mxu0 %v3804_v30 }
 0xa6b   : > { %3454 = vmatprep.subr.bf16.mxu1 %v3805_v34  ;;  %3476 = vmatprep.subr.bf16.mxu0 %v3806_v35 }
 0xa6e   : > { %3455 = vmatpush3.bf16.msra.mxu1 %v3807_v36  ;;  %3477 = vmatpush3.bf16.msra.mxu0 %v3808_v7 }
 0xa6f   : > { %3456 = vmatprep.subr.bf16.mxu1 %v3809_v37  ;;  %3478 = vmatprep.subr.bf16.mxu0 %v3810_v9 }
 0xa72   : > { %3457 = vmatpush3.bf16.msra.mxu1 %v3811_v38  ;;  %3479 = vmatpush3.bf16.msra.mxu0 %v3812_v39 }
 0xa73   : > { %3458 = vmatprep.subr.bf16.mxu1 %v3813_v40  ;;  %3480 = vmatprep.subr.bf16.mxu0 %v3814_v43 }
 0xa76   : > { %3459 = vmatpush3.bf16.msra.mxu1 %v3815_v6  ;;  %3481 = vmatpush3.bf16.msra.mxu0 %v3816_v44 }
 0xa77   : > { %3460 = vmatprep.subr.bf16.mxu1 %v3817_v50  ;;  %3482 = vmatprep.subr.bf16.mxu0 %v3818_v52 }
 0xa7a   : > { %3461 = vmatpush3.bf16.msra.mxu1 %v3819_v46  ;;  %3483 = vmatpush3.bf16.msra.mxu0 %v3820_v53 }
 0xa7b   : > { %3462 = vmatprep.subr.bf16.mxu1 %v3821_v55  ;;  %3484 = vmatprep.subr.bf16.mxu0 %v3822_v54 }
 0xa7e   : > { %3463 = vmatpush3.bf16.msra.mxu1 %v3823_v56  ;;  %3485 = vmatpush3.bf16.msra.mxu0 %v3824_v57 }
 0xa7f   : > { %3464 = vmatprep.subr.bf16.mxu1 %v3825_v58  ;;  %3486 = vmatprep.subr.bf16.mxu0 %v3826_v59 }
 0xa82   : > { %3465 = vmatpush3.bf16.msra.mxu1 %v3827_v60  ;;  %3487 = vmatpush3.bf16.msra.mxu0 %v3828_v3 }
 0xb18   : > { %v5086_v61 = vpop.f32.mrb[16].mxu1  ;;  %v5088_v32 = vpop.f32.mrb[20].mxu0 }
 0xb19   : > { %v5090_v62 = vpop.f32.mrb[17].mxu1  ;;  %v5092_v48 = vpop.f32.mrb[21].mxu0 }
 0xb1a   : > { %v5094_v42 = vpop.f32.mrb[18].mxu1  ;;  %v5096_v1 = vpop.f32.mrb[22].mxu0 }
 0xb1b   : > { %v5098_v4 = vpop.f32.mrb[19].mxu1  ;;  %v5100_v41 = vpop.f32.mrb[23].mxu0 }
 0xb38   : > { %v2556_v31 = vpop.f32.mrb[20].mxu1  ;;  %v2599_v15 = vpop.f32.mrb[24].mxu0 }
 0xb39   : > { %v5115_v33 = vadd.f32 %v2556_v31, %v2095_v8  ;;  %v5117_v16 = vadd.f32 %v2599_v15, %v2103_v10  ;;  %v2558_v17 = vpop.f32.mrb[21].mxu1  ;;  %v2601_v11 = vpop.f32.mrb[25].mxu0 }
 0xb3a   : > { %v5119_v20 = vadd.f32 %v2558_v17, %v2099_v13  ;;  %v5121_v21 = vadd.f32 %v2601_v11, %v2107_v14  ;;  %v2560_v24 = vpop.f32.mrb[22].mxu1  ;;  %v2603_v18 = vpop.f32.mrb[26].mxu0 }
 0xb3b   : > { %v2608_v22 = vmul.f32 %v5115_v33, %v5115_v33  ;;  %v2610_v23 = vmul.f32 %v5117_v16, %v5117_v16  ;;  %v5127_v25 = vadd.f32 %v2560_v24, %v2095_v8  ;;  %v5129_v12 = vadd.f32 %v2603_v18, %v2103_v10  ;;  %v2562_v26 = vpop.f32.mrb[23].mxu1  ;;  %v2605_v27 = vpop.f32.mrb[27].mxu0 }
 0xb3c   : > { %v2609_v28 = vmul.f32 %v5119_v20, %v5119_v20  ;;  %v2611_v45 = vmul.f32 %v5121_v21, %v5121_v21  ;;  %v5135_v30 = vadd.f32 %v2562_v26, %v2099_v13  ;;  %v5137_v34 = vadd.f32 %v2605_v27, %v2107_v14 }
 0xb3d   : > { %v2616_v35 = vmul.f32 %v2608_v22, %v5115_v33  ;;  %v2618_v36 = vmul.f32 %v2610_v23, %v5117_v16  ;;  %v2612_v7 = vmul.f32 %v5127_v25, %v5127_v25  ;;  %v2614_v37 = vmul.f32 %v5129_v12, %v5129_v12 }
 0xb3e   : > { %v2617_v9 = vmul.f32 %v2609_v28, %v5119_v20  ;;  %v2619_v38 = vmul.f32 %v2611_v45, %v5121_v21  ;;  %v2613_v39 = vmul.f32 %v5135_v30, %v5135_v30  ;;  %v2615_v40 = vmul.f32 %v5137_v34, %v5137_v34 }
 0xb3f   : > { %v2624_v43 = vmul.f32 0.044715, %v2616_v35  ;;  %v2626_v6 = vmul.f32 0.044715, %v2618_v36  ;;  %v2620_v44 = vmul.f32 %v2612_v7, %v5127_v25  ;;  %v2622_v50 = vmul.f32 %v2614_v37, %v5129_v12 }
 0xb40   : > { %v2625_v52 = vmul.f32 0.044715, %v2617_v9  ;;  %v2627_v46 = vmul.f32 0.044715, %v2619_v38  ;;  %v2621_v53 = vmul.f32 %v2613_v39, %v5135_v30  ;;  %v2623_v55 = vmul.f32 %v2615_v40, %v5137_v34 }
 0xb41   : > { %v2632_v54 = vadd.f32 %v2624_v43, %v5115_v33  ;;  %v2634_v56 = vadd.f32 %v2626_v6, %v5117_v16  ;;  %v2628_v57 = vmul.f32 0.044715, %v2620_v44  ;;  %v2630_v58 = vmul.f32 0.044715, %v2622_v50 }
 0xb42   : > { %v2633_v59 = vadd.f32 %v2625_v52, %v5119_v20  ;;  %v2635_v60 = vadd.f32 %v2627_v46, %v5121_v21  ;;  %v2629_v3 = vmul.f32 0.044715, %v2621_v53  ;;  %v2631_v63 = vmul.f32 0.044715, %v2623_v55 }
 0xb43   : > { %v2640_v49 = vmul.f32 0.7978846, %v2632_v54  ;;  %v2642_v2 = vmul.f32 0.7978846, %v2634_v56  ;;  %v2636_v0 = vadd.f32 %v2628_v57, %v5127_v25  ;;  %v2638_v8 = vadd.f32 %v2630_v58, %v5129_v12 }
 0xb44   : > { %v2641_v10 = vmul.f32 0.7978846, %v2633_v59  ;;  %v2643_v13 = vmul.f32 0.7978846, %v2635_v60  ;;  %v2637_v14 = vadd.f32 %v2629_v3, %v5135_v30  ;;  %v2639_v31 = vadd.f32 %v2631_v63, %v5137_v34 }
 0xb45   : > { %3851 = vtanh.f32 %v2640_v49  ;;  %v2644_v15 = vmul.f32 0.7978846, %v2636_v0  ;;  %v2646_v17 = vmul.f32 0.7978846, %v2638_v8  ;;  %v2086_v18 = vsub.s32 2, %v5009_v29 }
 0xb46   : > { %3853 = vtanh.f32 %v2642_v2  ;;  %v2645_v11 = vmul.f32 0.7978846, %v2637_v14  ;;  %v2647_v24 = vmul.f32 0.7978846, %v2639_v31  ;;  %v2082_v22 = vsub.s32 1, %v5009_v29 }
 0xb47   : > { %3855 = vtanh.f32 %v2641_v10  ;;  %v2090_v23 = vsub.s32 3, %v5009_v29  ;;  %v2079_v27 = vrot.slane %v5109_v5, %v1661_v19  ;;  %v2087_v28 = vrot.slane %v5109_v5, %v2086_v18 }
 0xb48   : > { %3857 = vtanh.f32 %v2643_v13  ;;  %v2083_v35 = vrot.slane %v5109_v5, %v2082_v22 }
 0xb49   : > { %3859 = vtanh.f32 %v2644_v15  ;;  %v2091_v37 = vrot.slane %v5109_v5, %v2090_v23  ;;  %v2471_v6 = vadd.f32 %v5086_v61, %v2079_v27  ;;  %v2514_v29 = vadd.f32 %v5088_v32, %v2087_v28 }
 0xb4a   : > { %3861 = vtanh.f32 %v2646_v17  ;;  %v2473_v52 = vadd.f32 %v5090_v62, %v2083_v35  ;;  %v2475_v2 = vadd.f32 %v5094_v42, %v2079_v27 }
 0xb4b   : > { %3863 = vtanh.f32 %v2645_v11  ;;  %v2516_v5 = vadd.f32 %v5092_v48, %v2091_v37 }
 0xb4c   : > { %3865 = vtanh.f32 %v2647_v24 }
 0xb4f   : > { %v3852_v26 = vpop.eup %3851 }
 0xb50   : > { %v3854_v45 = vpop.eup %3853  ;;  %v2656_v36 = vadd.f32 1.0, %v3852_v26 }
 0xb51   : > { %v3856_v7 = vpop.eup %3855  ;;  %v2658_v9 = vadd.f32 1.0, %v3854_v45 }
 0xb52   : > { %v3858_v38 = vpop.eup %3857  ;;  %v2664_v39 = vmul.f32 0.5, %v2656_v36  ;;  %v2657_v40 = vadd.f32 1.0, %v3856_v7 }
 0xb53   : > { %v3860_v43 = vpop.eup %3859  ;;  %v2666_v44 = vmul.f32 0.5, %v2658_v9  ;;  %v2659_v19 = vadd.f32 1.0, %v3858_v38 }
 0xb54   : > { %v3862_v50 = vpop.eup %3861  ;;  %v2672_v46 = vmul.f32 %v2664_v39, %v5115_v33  ;;  %v2660_v53 = vadd.f32 1.0, %v3860_v43  ;;  %v2665_v55 = vmul.f32 0.5, %v2657_v40 }
 0xb55   : > { %v3864_v54 = vpop.eup %3863  ;;  %v2674_v56 = vmul.f32 %v2666_v44, %v5117_v16  ;;  %v2662_v57 = vadd.f32 1.0, %v3862_v50  ;;  %v2667_v58 = vmul.f32 0.5, %v2659_v19  ;;  %v2518_v16 = vadd.f32 %v5096_v1, %v2087_v28 }
 0xb56   : > { %v3866_v59 = vpop.eup %3865  ;;  %v2668_v61 = vmul.f32 0.5, %v2660_v53  ;;  %v2661_v60 = vadd.f32 1.0, %v3864_v54  ;;  %v2673_v32 = vmul.f32 %v2665_v55, %v5119_v20  ;;  %v2680_v3 = vmul.f32 %v2672_v46, %v2471_v6 }
 0xb57   : > { %v2670_v63 = vmul.f32 0.5, %v2662_v57  ;;  %v2663_v49 = vadd.f32 1.0, %v3866_v59  ;;  %v2675_v62 = vmul.f32 %v2667_v58, %v5121_v21  ;;  %v2682_v33 = vmul.f32 %v2674_v56, %v2514_v29 }
 0xb58   : > { %v2676_v0 = vmul.f32 %v2668_v61, %v5127_v25  ;;  %v2669_v48 = vmul.f32 0.5, %v2661_v60  ;;  %v2681_v8 = vmul.f32 %v2673_v32, %v2473_v52  ;;  %v2477_v20 = vadd.f32 %v5098_v4, %v2083_v35 }
 0xb59   : > { %v2678_v10 = vmul.f32 %v2670_v63, %v5129_v12  ;;  %v2671_v13 = vmul.f32 0.5, %v2663_v49  ;;  %v2683_v14 = vmul.f32 %v2675_v62, %v2516_v5  ;;  %v2520_v21 = vadd.f32 %v5100_v41, %v2091_v37  ;;  %v3354_v41 = vld [vmem:[%s5373_s3] ss:$0 sm:$0xff] }
 0xb5a   : > { %v2677_v31 = vmul.f32 %v2669_v48, %v5135_v30  ;;  %v2684_v15 = vmul.f32 %v2676_v0, %v2475_v2 }
 0xb5b   : > { %v2679_v17 = vmul.f32 %v2671_v13, %v5137_v34  ;;  %v2686_v42 = vmul.f32 %v2678_v10, %v2518_v16 }
 0xb5c   : > { %v2685_v11 = vmul.f32 %v2677_v31, %v2477_v20  ;;  %v2688_v25 = vpack.c.bf16 %v2684_v15, %v2680_v3 }
 0xb5d   : > { %v2687_v24 = vmul.f32 %v2679_v17, %v2520_v21  ;;  %v2690_v18 = vpack.c.bf16 %v2686_v42, %v2682_v33 }
 0xb5e   : > { %v2689_v22 = vpack.c.bf16 %v2685_v11, %v2681_v8 }
 0xb5f   : > { %v2691_v1 = vpack.c.bf16 %v2687_v24, %v2683_v14 }
 0xb60   : > { %2922 = vmatprep.mubr.bf16.mxu1 %v2689_v22 }
 0xb61   : > { %2963 = vmatprep.mubr.bf16.mxu0 %v2691_v1  ;;  %2923 = vmatmul.mubr.bf16.vlgmr.msra.gmra.mrb[24].mxu1 %v2688_v25 }
 0xb62   : > { %2964 = vmatmul.mubr.bf16.vlgmr.msra.gmra.mrb[28].mxu0 %v2690_v18 }
 0xc34   : > { %v3466_v4 = vpop.f32.mrb[24].mxu1 }
 0xc35   : > { %v3488_v12 = vpop.f32.mrb[28].mxu0  ;;  %v3467_v30 = vpop.f32.mrb[25].mxu1 }
 0xc36   : > { %v3468_v34 = vadd.f32 %v3467_v30, %v3466_v4  ;;  %v3489_v23 = vpop.f32.mrb[29].mxu0  ;;  %v3469_v26 = vpop.f32.mrb[26].mxu1 }
 0xc37   : > { %v3490_v27 = vadd.f32 %v3489_v23, %v3488_v12  ;;  %v3491_v28 = vpop.f32.mrb[30].mxu0  ;;  %v3470_v45 = vpop.f32.mrb[27].mxu1 }
 0xc38   : > { %v2925_v35 = vadd.f32 %v3468_v34, %v3354_v41  ;;  %v3471_v36 = vadd.f32 %v3470_v45, %v3469_v26  ;;  %v3492_v7 = vpop.f32.mrb[31].mxu0 }
 0xc39   : > { %v3493_v37 = vadd.f32 %v3492_v7, %v3491_v28 }
 0xc3a   : > { %v2966_v9 = vadd.f32 %v3490_v27, %v2925_v35  ;;  %v2928_v38 = vadd.f32 %v3471_v36, %v3354_v41 }
 0xc3c   : > { %v2972_v39 = vadd.f32 %v2966_v9, %v5053_v47  ;;  %v2969_v40 = vadd.f32 %v3493_v37, %v2928_v38 }
 0xc3e   : > { %2974 = vst [vmem:[%s938_s7] sm:$0xff] %v2972_v39  ;;  %v2973_v43 = vadd.f32 %v2969_v40, %v5056_v51 }
 0xc40   : > { %2975 = vst [vmem:[%s938_s7 + $0x8] sm:$0xff] %v2973_v43 }
 0xc41   : > { %4168 = shalt.err (!%p4165_p6)
}
 0xc42   : > { %s4169_s22 = scalar_lea.hbm %s5199_s5, 256  ;;  %s4173_s14 = scalar_lea.hbm %s5375_s19, 512 }
 0xc43   : > { %p4170_p1 = scmp.ne.s32.totalorder %s5199_s5, %s4169_s22  ;;  %p4174_p7 = scmp.lt.u32.totalorder %s5199_s5, %s5375_s19 }
 0xc44   : > { %p4175_p12 = scmp.lt.u32.totalorder %s4173_s14, %s4169_s22  ;;  %p4177_p13 = scmp.lt.u32.totalorder %s4169_s22, %s5199_s5 }
 0xc45   : > { %p4171_p4 = pnand %p4170_p1, %p5376_p9 }
 0xc46   : > { %p4176_p10 = por %p4175_p12, %p4174_p7 }
 0xc47   : > { %p4172_p0 = pneg %p4171_p4 }
 0xc48   : > { %p4178_p11 = por %p4177_p13, %p4176_p10 }
 0xc4a   : > { %p4179_p5 = pnand %p4178_p11, %p4172_p0 }
 0xc4c   : > { %4182 = shalt.err (!%p4179_p5)
}
 0xc4d   : > { %s4270_s3 = smov 128   ;;  %s4271_s7 = smov 8  }
 0xc4e   : > { %3675 = dma.vmem_to_hbm [thread:$0]  (%p5376_p9), %s5194_s24, 256, %s5199_s5, %s2977_s8, %s4270_s3, %s4270_s3, %s4271_s7  }
 0xc4f PF: > { %s5377_s6 = sld [smem:[#allocation28_spill]]  ;;  %s5378_s0 = sld [smem:[#allocation33_spill]] }
 0xc50   : > { %p5380_p8 = scmp.ge.s32.totalorder %s4245_s30, 2 }
 0xc55   : > { %s3005_s16 = sand.u32 1, %s5377_s6   ;;  %p5379_p2 = scmp.ne.s32.totalorder %s5378_s0, 0 }
 0xc56   : > { %s3006_s21 = scalar_lea.sflag [#allocation4], %s3005_s16 }
 0xc57   : > { %p3710_p3 = pnand %p5380_p8, %p5379_p2 }
 0xc59   : > { %4228 = dma.done.wait (!%p3710_p3), %s3006_s21, 256  }
 0xc5a   : > { %4230 = vsyncadd (!%p3710_p3), %s3006_s21, 4294967040  ;;  %s5381_s30 = sld [smem:[#allocation30_spill]]  ;;  %s5382_s23 = sld [smem:[#allocation29_spill]] }
 0xc5b   : > { %s5383_s29 = sld [smem:[#allocation31_spill]]  ;;  %s5384_s3 = smov %s4237_s28 }
 0xc60   : > { %p44_p6 = scmp.ge.s32.totalorder %s5381_s30, 4   ;;  %s5385_s28 = smov %s5382_s23 }
 0xc62   :  { %46 = sbr.rel (!%p44_p6) target bundleno = 34 (0x22), region = 223 }
 0xc69   :  { %3011 = vsyncpa [#allocation3], 1 }
 0xc6a   :  { %3013 = vsyncpa [#allocation3 + $0x1], 1 }
 0xc6b   :  { %3014 = vsyncpa [#allocation6], 1 }
 0xc6c   :  { %3016 = vsyncpa [#allocation6 + $0x1], 1 }
 0xc6d   :  { %3017 = vsyncpa [#allocation9], 1 }
 0xc6e   :  { %3019 = vsyncpa [#allocation9 + $0x1], 1 }
 0xc6f   :  { %3020 = vsyncpa [#allocation12], 1 }
 0xc70   :  { %3021 = vsyncpa [#allocation15], 1 }
 0xc71   :  { %3022 = vsyncpa [#allocation18], 1 }
 0xc72   :  { %3023 = vsyncpa [#allocation4], 1 }
 0xc73   :  { %3025 = vsyncpa [#allocation4 + $0x1], 1 }

</bundles_post_ra>
